<compile_context>
chip_gen: v6e
topology: v6e:2x2x1
jax: 0.10.0
libtpu: 0.0.40
codegen_flags: <defaults>
</compile_context>

<pallas_src>
import functools

import jax
import jax.numpy as jnp
from jax import lax
from jax.experimental import pallas as pl
from jax.experimental.pallas import tpu as pltpu

# Safe on every generation (v7x physical VMEM is 64 MiB; v5e/v6e are 128 MiB).
_VMEM_LIMIT = 48 * 1024 * 1024


def _round_up(x, m):
    return (x + m - 1) // m * m


def _pick_time_chunk(t, target=8):
    tc = min(target, t)
    while t % tc:
        tc -= 1
    return tc


# ------------------------- tiled matmul + bias kernel -------------------------
def _matmul_bias_kernel(x_ref, w_ref, b_ref, o_ref):
    o_ref[...] = (
        jnp.dot(x_ref[...], w_ref[...], preferred_element_type=jnp.float32)
        + b_ref[...]
    ).astype(o_ref.dtype)


def matmul_bias(x2d, w, b, *, out_dtype=jnp.bfloat16, row_tile=256):
    """x2d: (N, K) bf16, w: (K, M) bf16, b: (1, M) f32 -> (N, M) out_dtype.

    Rows are cdiv-tiled; a trailing partial tile is handled by zero-padding the
    rows (sliced off the result), so every grid step sees a full, double-buffered
    block instead of one whole-array block.
    """
    n, k = x2d.shape
    m = w.shape[1]
    tm = row_tile if n >= row_tile else _round_up(n, 8)   # keep sublane alignment
    n_pad = _round_up(n, tm)
    if n_pad != n:
        x2d = jnp.pad(x2d, ((0, n_pad - n), (0, 0)))
    # TODO(synk): add a K grid axis + f32 VMEM accumulator for large K; at these
    # sizes the full (K, M) weight slab comfortably fits in VMEM.
    out = pl.pallas_call(
        _matmul_bias_kernel,
        out_shape=jax.ShapeDtypeStruct((n_pad, m), out_dtype),
        grid_spec=pltpu.PrefetchScalarGridSpec(
            num_scalar_prefetch=0,
            grid=(n_pad // tm,),
            in_specs=[
                pl.BlockSpec((tm, k), lambda i: (i, 0)),
                pl.BlockSpec((k, m), lambda i: (0, 0)),
                pl.BlockSpec((1, m), lambda i: (0, 0)),
            ],
            out_specs=pl.BlockSpec((tm, m), lambda i: (i, 0)),
        ),
        compiler_params=pltpu.CompilerParams(
            dimension_semantics=("parallel",),
            vmem_limit_bytes=_VMEM_LIMIT,
        ),
    )(x2d, w, b)
    return out[:n] if n_pad != n else out


# --------------------------- LSTM recurrence kernels ---------------------------
def _lstm_cell_step(gates_x_row, h_prev_bf16, c_prev, w_hh, h_dim):
    """One LSTM cell update.  Gate dim is packed (i, f, o, g)."""
    gates = gates_x_row.astype(jnp.float32) + jnp.dot(
        h_prev_bf16, w_hh, preferred_element_type=jnp.float32)      # (B, 4H) f32
    sig = jax.nn.sigmoid(gates[:, : 3 * h_dim])     # i | f | o  (single EUP pass)
    g_g = jnp.tanh(gates[:, 3 * h_dim:])            # g          (single EUP pass)
    i_g = sig[:, 0 * h_dim:1 * h_dim]
    f_g = sig[:, 1 * h_dim:2 * h_dim]
    o_g = sig[:, 2 * h_dim:3 * h_dim]
    c_new = f_g * c_prev + i_g * g_g
    h_new = o_g * jnp.tanh(c_new)
    return h_new, c_new


def _lstm_chunk_kernel(gates_x_ref, w_hh_ref, out_ref, h_scr, c_scr):
    """Intermediate layer: time-chunked recurrence, bf16 hidden-sequence output."""
    tc, _, four_h = gates_x_ref.shape
    h_dim = four_h // 4

    @pl.when(pl.program_id(0) == 0)
    def _():
        h_scr[...] = jnp.zeros_like(h_scr)          # zero initial state (h_0 / c_0)
        c_scr[...] = jnp.zeros_like(c_scr)

    # TODO(synk): hold w_hh in MXU weight staging (matmul_push_rhs/acc_lhs/pop)
    # across timesteps for large H; jnp.dot re-pushes the RHS every step.
    w_hh = w_hh_ref[...]                            # hoisted out of the time loop

    def step(t, carry):
        h_prev, c_prev = carry                      # bf16 h, f32 c, live in vregs
        h_new, c_new = _lstm_cell_step(gates_x_ref[t], h_prev, c_prev, w_hh, h_dim)
        out_ref[t] = h_new.astype(out_ref.dtype)
        return (h_new.astype(jnp.bfloat16), c_new)

    h_last, c_last = lax.fori_loop(0, tc, step, (h_scr[...], c_scr[...]), unroll=True)
    h_scr[...] = h_last                             # persist across grid (time) chunks
    c_scr[...] = c_last


def _lstm_chunk_fc_kernel(gates_x_ref, w_hh_ref, fc_w_ref, fc_b_ref,
                          out_ref, h_scr, c_scr):
    """Last layer: recurrence with nn.Linear fused into the per-step epilogue."""
    tc, _, four_h = gates_x_ref.shape
    h_dim = four_h // 4

    @pl.when(pl.program_id(0) == 0)
    def _():
        h_scr[...] = jnp.zeros_like(h_scr)
        c_scr[...] = jnp.zeros_like(c_scr)

    w_hh = w_hh_ref[...]
    fc_w = fc_w_ref[...]                            # (H, O_pad) bf16, hoisted
    fc_b = fc_b_ref[...]                            # (1, O_pad) f32, hoisted

    def step(t, carry):
        h_prev, c_prev = carry
        h_new, c_new = _lstm_cell_step(gates_x_ref[t], h_prev, c_prev, w_hh, h_dim)
        h_bf = h_new.astype(jnp.bfloat16)
        # Fused FC with 128-lane-padded output -> lane-dense unmasked stores.
        out_ref[t] = (jnp.dot(h_bf, fc_w, preferred_element_type=jnp.float32)
                      + fc_b).astype(out_ref.dtype)
        return (h_bf, c_new)

    h_last, c_last = lax.fori_loop(0, tc, step, (h_scr[...], c_scr[...]), unroll=True)
    h_scr[...] = h_last
    c_scr[...] = c_last


def lstm_recurrence(gates_x, w_hh_t, *, time_chunk=8):
    """gates_x: (T, B, 4H) bf16 (x@W_ih^T + bias folded, gates packed i|f|o|g),
    w_hh_t: (H, 4H) bf16.  Returns the bf16 hidden sequence (T, B, H)."""
    t_len, b, four_h = gates_x.shape
    h_dim = four_h // 4
    tc = _pick_time_chunk(t_len, time_chunk)
    # TODO(synk): on v7x, shard batch across the two TensorCores (leading
    # "parallel" grid axis over B-blocks) once B is padded to >=16 rows.
    return pl.pallas_call(
        _lstm_chunk_kernel,
        out_shape=jax.ShapeDtypeStruct((t_len, b, h_dim), jnp.bfloat16),
        grid_spec=pltpu.PrefetchScalarGridSpec(
            num_scalar_prefetch=0,
            grid=(t_len // tc,),
            in_specs=[
                pl.BlockSpec((tc, b, four_h), lambda i: (i, 0, 0)),
                pl.BlockSpec((h_dim, four_h), lambda i: (0, 0)),
            ],
            out_specs=pl.BlockSpec((tc, b, h_dim), lambda i: (i, 0, 0)),
            scratch_shapes=[
                pltpu.VMEM((b, h_dim), jnp.bfloat16),   # carried h (bf16 MXU operand)
                pltpu.VMEM((b, h_dim), jnp.float32),    # carried c (f32 accumulation)
            ],
        ),
        compiler_params=pltpu.CompilerParams(
            dimension_semantics=("arbitrary",),         # time is a serial recurrence
            vmem_limit_bytes=_VMEM_LIMIT,
        ),
    )(gates_x, w_hh_t)


def lstm_recurrence_fc(gates_x, w_hh_t, fc_w_pad_t, fc_b_pad, *, time_chunk=8):
    """Last layer: recurrence + fused Linear.  Returns (T, B, O_pad) f32."""
    t_len, b, four_h = gates_x.shape
    h_dim = four_h // 4
    o_pad = fc_w_pad_t.shape[1]
    tc = _pick_time_chunk(t_len, time_chunk)
    return pl.pallas_call(
        _lstm_chunk_fc_kernel,
        out_shape=jax.ShapeDtypeStruct((t_len, b, o_pad), jnp.float32),
        grid_spec=pltpu.PrefetchScalarGridSpec(
            num_scalar_prefetch=0,
            grid=(t_len // tc,),
            in_specs=[
                pl.BlockSpec((tc, b, four_h), lambda i: (i, 0, 0)),
                pl.BlockSpec((h_dim, four_h), lambda i: (0, 0)),
                pl.BlockSpec((h_dim, o_pad), lambda i: (0, 0)),
                pl.BlockSpec((1, o_pad), lambda i: (0, 0)),
            ],
            out_specs=pl.BlockSpec((tc, b, o_pad), lambda i: (i, 0, 0)),
            scratch_shapes=[
                pltpu.VMEM((b, h_dim), jnp.bfloat16),
                pltpu.VMEM((b, h_dim), jnp.float32),
            ],
        ),
        compiler_params=pltpu.CompilerParams(
            dimension_semantics=("arbitrary",),
            vmem_limit_bytes=_VMEM_LIMIT,
        ),
    )(gates_x, w_hh_t, fc_w_pad_t, fc_b_pad)


# --------------------------------- Full model ---------------------------------
def _reorder_gates_ifgo_to_ifog(w):
    """PyTorch packs the leading 4H dim as (i, f, g, o); repack to (i, f, o, g)."""
    four_h = w.shape[0]
    h_dim = four_h // 4
    w4 = w.reshape(4, h_dim, *w.shape[1:])
    return w4[jnp.array([0, 1, 3, 2])].reshape(four_h, *w.shape[1:])


def init_lstm_params(key, input_dim, hidden_dim, n_layers, output_dim):
    """PyTorch-shaped init (uniform(-1/sqrt(H), 1/sqrt(H))); matmul weights bf16,
    gate dim re-packed to (i, f, o, g), biases folded, fc padded to 128 lanes."""
    params = {"layers": []}
    stdv = 1.0 / jnp.sqrt(jnp.float32(hidden_dim))
    for layer in range(n_layers):
        d_in = input_dim if layer == 0 else hidden_dim
        key, k1, k2, k3, k4 = jax.random.split(key, 5)
        w_ih = jax.random.uniform(k1, (4 * hidden_dim, d_in), jnp.float32, -stdv, stdv)
        w_hh = jax.random.uniform(k2, (4 * hidden_dim, hidden_dim), jnp.float32, -stdv, stdv)
        b_ih = jax.random.uniform(k3, (4 * hidden_dim,), jnp.float32, -stdv, stdv)
        b_hh = jax.random.uniform(k4, (4 * hidden_dim,), jnp.float32, -stdv, stdv)
        w_ih = _reorder_gates_ifgo_to_ifog(w_ih)
        w_hh = _reorder_gates_ifgo_to_ifog(w_hh)
        bias = _reorder_gates_ifgo_to_ifog(b_ih + b_hh).reshape(1, 4 * hidden_dim)
        params["layers"].append({
            "w_ih_t": w_ih.T.astype(jnp.bfloat16),        # (d_in, 4H)
            "w_hh_t": w_hh.T.astype(jnp.bfloat16),        # (H, 4H)
            "bias": bias,                                  # (1, 4H) f32, folded
        })
    key, k5, k6 = jax.random.split(key, 3)
    fc_w = jax.random.uniform(k5, (output_dim, hidden_dim), jnp.float32, -stdv, stdv)
    fc_b = jax.random.uniform(k6, (output_dim,), jnp.float32, -stdv, stdv)
    o_pad = _round_up(max(output_dim, 128), 128)
    fc_w_pad = jnp.zeros((hidden_dim, o_pad), jnp.float32).at[:, :output_dim].set(fc_w.T)
    fc_b_pad = jnp.zeros((1, o_pad), jnp.float32).at[0, :output_dim].set(fc_b)
    params["fc_w_pad_t"] = fc_w_pad.astype(jnp.bfloat16)   # (H, O_pad) bf16
    params["fc_b_pad"] = fc_b_pad                           # (1, O_pad) f32
    return params


def lstm_model_forward(params, x, *, output_dim):
    """Equivalent of LSTM.forward: multi-layer LSTM (zero initial state) + Linear."""
    b, t_len, _ = x.shape
    h_tm = jnp.transpose(x, (1, 0, 2)).astype(jnp.bfloat16)    # (T, B, D) time-major
    n_layers = len(params["layers"])
    out_tm = None
    for li, lp in enumerate(params["layers"]):
        d_in = h_tm.shape[-1]
        four_h = lp["w_ih_t"].shape[1]
        # Input projection + bias hoisted off the serial path: one (T*B, d_in) matmul.
        gx = matmul_bias(h_tm.reshape(t_len * b, d_in), lp["w_ih_t"], lp["bias"],
                         out_dtype=jnp.bfloat16).reshape(t_len, b, four_h)
        if li + 1 < n_layers:
            h_tm = lstm_recurrence(gx, lp["w_hh_t"])            # (T, B, H) bf16
        else:
            out_tm = lstm_recurrence_fc(gx, lp["w_hh_t"],
                                        params["fc_w_pad_t"], params["fc_b_pad"])
    # Slice the real FC columns off the 128-lane-padded output; back to batch-first.
    return jnp.transpose(out_tm[:, :, :output_dim], (1, 0, 2))  # (B, T, O) f32


if __name__ == "__main__":
    B, T = 2, 8
    INPUT_DIM, HIDDEN_DIM, N_LAYERS, OUTPUT_DIM = 16, 32, 2, 8

    key = jax.random.PRNGKey(0)
    key, kx = jax.random.split(key)
    x = jax.random.normal(kx, (B, T, INPUT_DIM), jnp.float32)

    params = init_lstm_params(key, INPUT_DIM, HIDDEN_DIM, N_LAYERS, OUTPUT_DIM)

    fwd = jax.jit(functools.partial(lstm_model_forward, output_dim=OUTPUT_DIM))
    out = jax.block_until_ready(fwd(params, x))

    assert out.shape == (B, T, OUTPUT_DIM), out.shape
    assert bool(jnp.all(jnp.isfinite(out)))
    print("KERNEL_OK")
</pallas_src>

<mosaic_0001>
module attributes {stable_mosaic.version = 11 : i64} {
  func.func @_matmul_bias_kernel(%arg0: i32, %arg1: memref<16x16xbf16, #tpu.memory_space<vmem>>, %arg2: memref<16x128xbf16, #tpu.memory_space<vmem>>, %arg3: memref<1x128xf32, #tpu.memory_space<vmem>>, %arg4: memref<16x128xbf16, #tpu.memory_space<vmem>>) attributes {dimension_semantics = [#tpu.dimension_semantics<parallel>], iteration_bounds = array<i64: 1>, scalar_prefetch = 0 : i64, scratch_operands = 0 : i64, tpu.core_type = #tpu.core_type<tc>, window_params = [{transform_indices = @transform_0, window_bounds = array<i64: 16, 16>}, {pipeline_mode = #tpu.pipeline_mode<synchronous>, transform_indices = @transform_1, window_bounds = array<i64: 16, 128>}, {pipeline_mode = #tpu.pipeline_mode<synchronous>, transform_indices = @transform_2, window_bounds = array<i64: 1, 128>}, {transform_indices = @transform_3, window_bounds = array<i64: 16, 128>}]} {
    %c0 = arith.constant 0 : index
    %c0_0 = arith.constant 0 : index
    %0 = vector.load %arg1[%c0, %c0_0] : memref<16x16xbf16, #tpu.memory_space<vmem>>, vector<16x16xbf16>
    %c0_1 = arith.constant 0 : index
    %c0_2 = arith.constant 0 : index
    %1 = vector.load %arg2[%c0_1, %c0_2] : memref<16x128xbf16, #tpu.memory_space<vmem>>, vector<16x128xbf16>
    %cst = arith.constant dense<0.000000e+00> : vector<16x128xf32>
    %2 = tpu.matmul %0, %1, %cst {dimension_numbers = #tpu.dot_dimension_numbers<[1], [0], [0], [1], [0, 0, 1, 1], [], []>} : vector<16x16xbf16>, vector<16x128xbf16>, vector<16x128xf32> -> vector<16x128xf32>
    %c0_3 = arith.constant 0 : index
    %c0_4 = arith.constant 0 : index
    %3 = vector.load %arg3[%c0_3, %c0_4] : memref<1x128xf32, #tpu.memory_space<vmem>>, vector<1x128xf32>
    %4 = vector.broadcast %3 : vector<1x128xf32> to vector<16x128xf32>
    %5 = arith.addf %2, %4 : vector<16x128xf32>
    %6 = arith.truncf %5 : vector<16x128xf32> to vector<16x128xbf16>
    %c0_5 = arith.constant 0 : index
    %c0_6 = arith.constant 0 : index
    %7 = vector.load %arg4[%c0_5, %c0_6] : memref<16x128xbf16, #tpu.memory_space<vmem>>, vector<16x128xbf16>
    tpu.vector_store %arg4[%c0_5, %c0_6], %6 {strides = array<i32>} : memref<16x128xbf16, #tpu.memory_space<vmem>>, vector<16x128xbf16>,
    return
  }
  func.func @transform_0(%arg0: i32) -> (i32, i32) {
    %c0_i32 = arith.constant 0 : i32
    %c0_i32_0 = arith.constant 0 : i32
    return %arg0, %c0_i32 : i32, i32
  }
  func.func @transform_1(%arg0: i32) -> (i32, i32) {
    %c0_i32 = arith.constant 0 : i32
    %c0_i32_0 = arith.constant 0 : i32
    %c0_i32_1 = arith.constant 0 : i32
    return %c0_i32, %c0_i32_0 : i32, i32
  }
  func.func @transform_2(%arg0: i32) -> (i32, i32) {
    %c0_i32 = arith.constant 0 : i32
    %c0_i32_0 = arith.constant 0 : i32
    %c0_i32_1 = arith.constant 0 : i32
    return %c0_i32, %c0_i32_0 : i32, i32
  }
  func.func @transform_3(%arg0: i32) -> (i32, i32) {
    %c0_i32 = arith.constant 0 : i32
    %c0_i32_0 = arith.constant 0 : i32
    return %arg0, %c0_i32 : i32, i32
  }
}

module attributes {stable_mosaic.version = 11 : i64} {
  func.func @_lstm_chunk_kernel(%arg0: i32, %arg1: memref<8x2x128xbf16, #tpu.memory_space<vmem>>, %arg2: memref<32x128xbf16, #tpu.memory_space<vmem>>, %arg3: memref<8x2x32xbf16, #tpu.memory_space<vmem>>, %arg4: memref<2x32xbf16, #tpu.memory_space<vmem>>, %arg5: memref<2x32xf32, #tpu.memory_space<vmem>>) attributes {dimension_semantics = [#tpu.dimension_semantics<arbitrary>], iteration_bounds = array<i64: 1>, scalar_prefetch = 0 : i64, scratch_operands = 2 : i64, tpu.core_type = #tpu.core_type<tc>, window_params = [{transform_indices = @transform_0, window_bounds = array<i64: 8, 2, 128>}, {pipeline_mode = #tpu.pipeline_mode<synchronous>, transform_indices = @transform_1, window_bounds = array<i64: 32, 128>}, {transform_indices = @transform_2, window_bounds = array<i64: 8, 2, 32>}]} {
    %c0_i32 = arith.constant 0 : i32
    %0 = arith.cmpi eq, %arg0, %c0_i32 : i32
    %1 = arith.extui %0 : i1 to i32
    %c0_i32_0 = arith.constant 0 : i32
    %2 = arith.cmpi ne, %1, %c0_i32_0 : i32
    scf.if %2 {
      %cst_58 = arith.constant 0.000000e+00 : bf16
      %232 = vector.broadcast %cst_58 : bf16 to vector<2x32xbf16>
      %c0_59 = arith.constant 0 : index
      %c0_60 = arith.constant 0 : index
      %233 = vector.load %arg4[%c0_59, %c0_60] : memref<2x32xbf16, #tpu.memory_space<vmem>>, vector<2x32xbf16>
      tpu.vector_store %arg4[%c0_59, %c0_60], %232 {strides = array<i32>} : memref<2x32xbf16, #tpu.memory_space<vmem>>, vector<2x32xbf16>,
      %cst_61 = arith.constant 0.000000e+00 : f32
      %234 = vector.broadcast %cst_61 : f32 to vector<2x32xf32>
      %c0_62 = arith.constant 0 : index
      %c0_63 = arith.constant 0 : index
      %235 = vector.load %arg5[%c0_62, %c0_63] : memref<2x32xf32, #tpu.memory_space<vmem>>, vector<2x32xf32>
      tpu.vector_store %arg5[%c0_62, %c0_63], %234 {strides = array<i32>} : memref<2x32xf32, #tpu.memory_space<vmem>>, vector<2x32xf32>,
    } else {
    }
    %c0 = arith.constant 0 : index
    %c0_1 = arith.constant 0 : index
    %3 = vector.load %arg2[%c0, %c0_1] : memref<32x128xbf16, #tpu.memory_space<vmem>>, vector<32x128xbf16>
    %c0_2 = arith.constant 0 : index
    %c0_3 = arith.constant 0 : index
    %4 = vector.load %arg4[%c0_2, %c0_3] : memref<2x32xbf16, #tpu.memory_space<vmem>>, vector<2x32xbf16>
    %c0_4 = arith.constant 0 : index
    %c0_5 = arith.constant 0 : index
    %5 = vector.load %arg5[%c0_4, %c0_5] : memref<2x32xf32, #tpu.memory_space<vmem>>, vector<2x32xf32>
    %c0_i32_6 = arith.constant 0 : i32
    %6 = arith.index_cast %c0_i32_6 : i32 to index
    %c0_7 = arith.constant 0 : index
    %c0_8 = arith.constant 0 : index
    %7 = vector.load %arg1[%6, %c0_7, %c0_8] : memref<8x2x128xbf16, #tpu.memory_space<vmem>>, vector<1x2x128xbf16>
    %8 = vector.shape_cast %7 : vector<1x2x128xbf16> to vector<2x128xbf16>
    %9 = arith.extf %8 : vector<2x128xbf16> to vector<2x128xf32>
    %cst = arith.constant dense<0.000000e+00> : vector<2x128xf32>
    %10 = tpu.matmul %4, %3, %cst {dimension_numbers = #tpu.dot_dimension_numbers<[1], [0], [0], [1], [0, 0, 1, 1], [], []>} : vector<2x32xbf16>, vector<32x128xbf16>, vector<2x128xf32> -> vector<2x128xf32>
    %11 = arith.addf %9, %10 : vector<2x128xf32>
    %12 = vector.extract_strided_slice %11 {offsets = [0, 0], sizes = [2, 96], strides = [1, 1]} : vector<2x128xf32> to vector<2x96xf32>
    %13 = arith.negf %12 : vector<2x96xf32>
    %14 = math.exp %13 : vector<2x96xf32>
    %cst_9 = arith.constant 1.000000e+00 : f32
    %15 = vector.broadcast %cst_9 : f32 to vector<2x96xf32>
    %16 = arith.addf %15, %14 : vector<2x96xf32>
    %17 = arith.divf %15, %16 : vector<2x96xf32>
    %18 = vector.extract_strided_slice %11 {offsets = [0, 96], sizes = [2, 32], strides = [1, 1]} : vector<2x128xf32> to vector<2x32xf32>
    %19 = math.tanh %18 : vector<2x32xf32>
    %20 = vector.extract_strided_slice %17 {offsets = [0, 0], sizes = [2, 32], strides = [1, 1]} : vector<2x96xf32> to vector<2x32xf32>
    %21 = vector.extract_strided_slice %17 {offsets = [0, 32], sizes = [2, 32], strides = [1, 1]} : vector<2x96xf32> to vector<2x32xf32>
    %22 = vector.extract_strided_slice %17 {offsets = [0, 64], sizes = [2, 32], strides = [1, 1]} : vector<2x96xf32> to vector<2x32xf32>
    %23 = arith.mulf %21, %5 : vector<2x32xf32>
    %24 = arith.mulf %20, %19 : vector<2x32xf32>
    %25 = arith.addf %23, %24 : vector<2x32xf32>
    %26 = math.tanh %25 : vector<2x32xf32>
    %27 = arith.mulf %22, %26 : vector<2x32xf32>
    %28 = arith.truncf %27 : vector<2x32xf32> to vector<2x32xbf16>
    %29 = arith.index_cast %c0_i32_6 : i32 to index
    %c0_10 = arith.constant 0 : index
    %c0_11 = arith.constant 0 : index
    %30 = vector.load %arg3[%29, %c0_10, %c0_11] : memref<8x2x32xbf16, #tpu.memory_space<vmem>>, vector<1x2x32xbf16>
    %31 = vector.shape_cast %30 : vector<1x2x32xbf16> to vector<2x32xbf16>
    %32 = vector.shape_cast %28 : vector<2x32xbf16> to vector<1x2x32xbf16>
    tpu.vector_store %arg3[%29, %c0_10, %c0_11], %32 {strides = array<i32>} : memref<8x2x32xbf16, #tpu.memory_space<vmem>>, vector<1x2x32xbf16>,
    %33 = arith.truncf %27 : vector<2x32xf32> to vector<2x32xbf16>
    %c1_i32 = arith.constant 1 : i32
    %34 = arith.index_cast %c1_i32 : i32 to index
    %c0_12 = arith.constant 0 : index
    %c0_13 = arith.constant 0 : index
    %35 = vector.load %arg1[%34, %c0_12, %c0_13] : memref<8x2x128xbf16, #tpu.memory_space<vmem>>, vector<1x2x128xbf16>
    %36 = vector.shape_cast %35 : vector<1x2x128xbf16> to vector<2x128xbf16>
    %37 = arith.extf %36 : vector<2x128xbf16> to vector<2x128xf32>
    %cst_14 = arith.constant dense<0.000000e+00> : vector<2x128xf32>
    %38 = tpu.matmul %33, %3, %cst_14 {dimension_numbers = #tpu.dot_dimension_numbers<[1], [0], [0], [1], [0, 0, 1, 1], [], []>} : vector<2x32xbf16>, vector<32x128xbf16>, vector<2x128xf32> -> vector<2x128xf32>
    %39 = arith.addf %37, %38 : vector<2x128xf32>
    %40 = vector.extract_strided_slice %39 {offsets = [0, 0], sizes = [2, 96], strides = [1, 1]} : vector<2x128xf32> to vector<2x96xf32>
    %41 = arith.negf %40 : vector<2x96xf32>
    %42 = math.exp %41 : vector<2x96xf32>
    %cst_15 = arith.constant 1.000000e+00 : f32
    %43 = vector.broadcast %cst_15 : f32 to vector<2x96xf32>
    %44 = arith.addf %43, %42 : vector<2x96xf32>
    %45 = arith.divf %43, %44 : vector<2x96xf32>
    %46 = vector.extract_strided_slice %39 {offsets = [0, 96], sizes = [2, 32], strides = [1, 1]} : vector<2x128xf32> to vector<2x32xf32>
    %47 = math.tanh %46 : vector<2x32xf32>
    %48 = vector.extract_strided_slice %45 {offsets = [0, 0], sizes = [2, 32], strides = [1, 1]} : vector<2x96xf32> to vector<2x32xf32>
    %49 = vector.extract_strided_slice %45 {offsets = [0, 32], sizes = [2, 32], strides = [1, 1]} : vector<2x96xf32> to vector<2x32xf32>
    %50 = vector.extract_strided_slice %45 {offsets = [0, 64], sizes = [2, 32], strides = [1, 1]} : vector<2x96xf32> to vector<2x32xf32>
    %51 = arith.mulf %49, %25 : vector<2x32xf32>
    %52 = arith.mulf %48, %47 : vector<2x32xf32>
    %53 = arith.addf %51, %52 : vector<2x32xf32>
    %54 = math.tanh %53 : vector<2x32xf32>
    %55 = arith.mulf %50, %54 : vector<2x32xf32>
    %56 = arith.truncf %55 : vector<2x32xf32> to vector<2x32xbf16>
    %57 = arith.index_cast %c1_i32 : i32 to index
    %c0_16 = arith.constant 0 : index
    %c0_17 = arith.constant 0 : index
    %58 = vector.load %arg3[%57, %c0_16, %c0_17] : memref<8x2x32xbf16, #tpu.memory_space<vmem>>, vector<1x2x32xbf16>
    %59 = vector.shape_cast %58 : vector<1x2x32xbf16> to vector<2x32xbf16>
    %60 = vector.shape_cast %56 : vector<2x32xbf16> to vector<1x2x32xbf16>
    tpu.vector_store %arg3[%57, %c0_16, %c0_17], %60 {strides = array<i32>} : memref<8x2x32xbf16, #tpu.memory_space<vmem>>, vector<1x2x32xbf16>,
    %61 = arith.truncf %55 : vector<2x32xf32> to vector<2x32xbf16>
    %c2_i32 = arith.constant 2 : i32
    %62 = arith.index_cast %c2_i32 : i32 to index
    %c0_18 = arith.constant 0 : index
    %c0_19 = arith.constant 0 : index
    %63 = vector.load %arg1[%62, %c0_18, %c0_19] : memref<8x2x128xbf16, #tpu.memory_space<vmem>>, vector<1x2x128xbf16>
    %64 = vector.shape_cast %63 : vector<1x2x128xbf16> to vector<2x128xbf16>
    %65 = arith.extf %64 : vector<2x128xbf16> to vector<2x128xf32>
    %cst_20 = arith.constant dense<0.000000e+00> : vector<2x128xf32>
    %66 = tpu.matmul %61, %3, %cst_20 {dimension_numbers = #tpu.dot_dimension_numbers<[1], [0], [0], [1], [0, 0, 1, 1], [], []>} : vector<2x32xbf16>, vector<32x128xbf16>, vector<2x128xf32> -> vector<2x128xf32>
    %67 = arith.addf %65, %66 : vector<2x128xf32>
    %68 = vector.extract_strided_slice %67 {offsets = [0, 0], sizes = [2, 96], strides = [1, 1]} : vector<2x128xf32> to vector<2x96xf32>
    %69 = arith.negf %68 : vector<2x96xf32>
    %70 = math.exp %69 : vector<2x96xf32>
    %cst_21 = arith.constant 1.000000e+00 : f32
    %71 = vector.broadcast %cst_21 : f32 to vector<2x96xf32>
    %72 = arith.addf %71, %70 : vector<2x96xf32>
    %73 = arith.divf %71, %72 : vector<2x96xf32>
    %74 = vector.extract_strided_slice %67 {offsets = [0, 96], sizes = [2, 32], strides = [1, 1]} : vector<2x128xf32> to vector<2x32xf32>
    %75 = math.tanh %74 : vector<2x32xf32>
    %76 = vector.extract_strided_slice %73 {offsets = [0, 0], sizes = [2, 32], strides = [1, 1]} : vector<2x96xf32> to vector<2x32xf32>
    %77 = vector.extract_strided_slice %73 {offsets = [0, 32], sizes = [2, 32], strides = [1, 1]} : vector<2x96xf32> to vector<2x32xf32>
    %78 = vector.extract_strided_slice %73 {offsets = [0, 64], sizes = [2, 32], strides = [1, 1]} : vector<2x96xf32> to vector<2x32xf32>
    %79 = arith.mulf %77, %53 : vector<2x32xf32>
    %80 = arith.mulf %76, %75 : vector<2x32xf32>
    %81 = arith.addf %79, %80 : vector<2x32xf32>
    %82 = math.tanh %81 : vector<2x32xf32>
    %83 = arith.mulf %78, %82 : vector<2x32xf32>
    %84 = arith.truncf %83 : vector<2x32xf32> to vector<2x32xbf16>
    %85 = arith.index_cast %c2_i32 : i32 to index
    %c0_22 = arith.constant 0 : index
    %c0_23 = arith.constant 0 : index
    %86 = vector.load %arg3[%85, %c0_22, %c0_23] : memref<8x2x32xbf16, #tpu.memory_space<vmem>>, vector<1x2x32xbf16>
    %87 = vector.shape_cast %86 : vector<1x2x32xbf16> to vector<2x32xbf16>
    %88 = vector.shape_cast %84 : vector<2x32xbf16> to vector<1x2x32xbf16>
    tpu.vector_store %arg3[%85, %c0_22, %c0_23], %88 {strides = array<i32>} : memref<8x2x32xbf16, #tpu.memory_space<vmem>>, vector<1x2x32xbf16>,
    %89 = arith.truncf %83 : vector<2x32xf32> to vector<2x32xbf16>
    %c3_i32 = arith.constant 3 : i32
    %90 = arith.index_cast %c3_i32 : i32 to index
    %c0_24 = arith.constant 0 : index
    %c0_25 = arith.constant 0 : index
    %91 = vector.load %arg1[%90, %c0_24, %c0_25] : memref<8x2x128xbf16, #tpu.memory_space<vmem>>, vector<1x2x128xbf16>
    %92 = vector.shape_cast %91 : vector<1x2x128xbf16> to vector<2x128xbf16>
    %93 = arith.extf %92 : vector<2x128xbf16> to vector<2x128xf32>
    %cst_26 = arith.constant dense<0.000000e+00> : vector<2x128xf32>
    %94 = tpu.matmul %89, %3, %cst_26 {dimension_numbers = #tpu.dot_dimension_numbers<[1], [0], [0], [1], [0, 0, 1, 1], [], []>} : vector<2x32xbf16>, vector<32x128xbf16>, vector<2x128xf32> -> vector<2x128xf32>
    %95 = arith.addf %93, %94 : vector<2x128xf32>
    %96 = vector.extract_strided_slice %95 {offsets = [0, 0], sizes = [2, 96], strides = [1, 1]} : vector<2x128xf32> to vector<2x96xf32>
    %97 = arith.negf %96 : vector<2x96xf32>
    %98 = math.exp %97 : vector<2x96xf32>
    %cst_27 = arith.constant 1.000000e+00 : f32
    %99 = vector.broadcast %cst_27 : f32 to vector<2x96xf32>
    %100 = arith.addf %99, %98 : vector<2x96xf32>
    %101 = arith.divf %99, %100 : vector<2x96xf32>
    %102 = vector.extract_strided_slice %95 {offsets = [0, 96], sizes = [2, 32], strides = [1, 1]} : vector<2x128xf32> to vector<2x32xf32>
    %103 = math.tanh %102 : vector<2x32xf32>
    %104 = vector.extract_strided_slice %101 {offsets = [0, 0], sizes = [2, 32], strides = [1, 1]} : vector<2x96xf32> to vector<2x32xf32>
    %105 = vector.extract_strided_slice %101 {offsets = [0, 32], sizes = [2, 32], strides = [1, 1]} : vector<2x96xf32> to vector<2x32xf32>
    %106 = vector.extract_strided_slice %101 {offsets = [0, 64], sizes = [2, 32], strides = [1, 1]} : vector<2x96xf32> to vector<2x32xf32>
    %107 = arith.mulf %105, %81 : vector<2x32xf32>
    %108 = arith.mulf %104, %103 : vector<2x32xf32>
    %109 = arith.addf %107, %108 : vector<2x32xf32>
    %110 = math.tanh %109 : vector<2x32xf32>
    %111 = arith.mulf %106, %110 : vector<2x32xf32>
    %112 = arith.truncf %111 : vector<2x32xf32> to vector<2x32xbf16>
    %113 = arith.index_cast %c3_i32 : i32 to index
    %c0_28 = arith.constant 0 : index
    %c0_29 = arith.constant 0 : index
    %114 = vector.load %arg3[%113, %c0_28, %c0_29] : memref<8x2x32xbf16, #tpu.memory_space<vmem>>, vector<1x2x32xbf16>
    %115 = vector.shape_cast %114 : vector<1x2x32xbf16> to vector<2x32xbf16>
    %116 = vector.shape_cast %112 : vector<2x32xbf16> to vector<1x2x32xbf16>
    tpu.vector_store %arg3[%113, %c0_28, %c0_29], %116 {strides = array<i32>} : memref<8x2x32xbf16, #tpu.memory_space<vmem>>, vector<1x2x32xbf16>,
    %117 = arith.truncf %111 : vector<2x32xf32> to vector<2x32xbf16>
    %c4_i32 = arith.constant 4 : i32
    %118 = arith.index_cast %c4_i32 : i32 to index
    %c0_30 = arith.constant 0 : index
    %c0_31 = arith.constant 0 : index
    %119 = vector.load %arg1[%118, %c0_30, %c0_31] : memref<8x2x128xbf16, #tpu.memory_space<vmem>>, vector<1x2x128xbf16>
    %120 = vector.shape_cast %119 : vector<1x2x128xbf16> to vector<2x128xbf16>
    %121 = arith.extf %120 : vector<2x128xbf16> to vector<2x128xf32>
    %cst_32 = arith.constant dense<0.000000e+00> : vector<2x128xf32>
    %122 = tpu.matmul %117, %3, %cst_32 {dimension_numbers = #tpu.dot_dimension_numbers<[1], [0], [0], [1], [0, 0, 1, 1], [], []>} : vector<2x32xbf16>, vector<32x128xbf16>, vector<2x128xf32> -> vector<2x128xf32>
    %123 = arith.addf %121, %122 : vector<2x128xf32>
    %124 = vector.extract_strided_slice %123 {offsets = [0, 0], sizes = [2, 96], strides = [1, 1]} : vector<2x128xf32> to vector<2x96xf32>
    %125 = arith.negf %124 : vector<2x96xf32>
    %126 = math.exp %125 : vector<2x96xf32>
    %cst_33 = arith.constant 1.000000e+00 : f32
    %127 = vector.broadcast %cst_33 : f32 to vector<2x96xf32>
    %128 = arith.addf %127, %126 : vector<2x96xf32>
    %129 = arith.divf %127, %128 : vector<2x96xf32>
    %130 = vector.extract_strided_slice %123 {offsets = [0, 96], sizes = [2, 32], strides = [1, 1]} : vector<2x128xf32> to vector<2x32xf32>
    %131 = math.tanh %130 : vector<2x32xf32>
    %132 = vector.extract_strided_slice %129 {offsets = [0, 0], sizes = [2, 32], strides = [1, 1]} : vector<2x96xf32> to vector<2x32xf32>
    %133 = vector.extract_strided_slice %129 {offsets = [0, 32], sizes = [2, 32], strides = [1, 1]} : vector<2x96xf32> to vector<2x32xf32>
    %134 = vector.extract_strided_slice %129 {offsets = [0, 64], sizes = [2, 32], strides = [1, 1]} : vector<2x96xf32> to vector<2x32xf32>
    %135 = arith.mulf %133, %109 : vector<2x32xf32>
    %136 = arith.mulf %132, %131 : vector<2x32xf32>
    %137 = arith.addf %135, %136 : vector<2x32xf32>
    %138 = math.tanh %137 : vector<2x32xf32>
    %139 = arith.mulf %134, %138 : vector<2x32xf32>
    %140 = arith.truncf %139 : vector<2x32xf32> to vector<2x32xbf16>
    %141 = arith.index_cast %c4_i32 : i32 to index
    %c0_34 = arith.constant 0 : index
    %c0_35 = arith.constant 0 : index
    %142 = vector.load %arg3[%141, %c0_34, %c0_35] : memref<8x2x32xbf16, #tpu.memory_space<vmem>>, vector<1x2x32xbf16>
    %143 = vector.shape_cast %142 : vector<1x2x32xbf16> to vector<2x32xbf16>
    %144 = vector.shape_cast %140 : vector<2x32xbf16> to vector<1x2x32xbf16>
    tpu.vector_store %arg3[%141, %c0_34, %c0_35], %144 {strides = array<i32>} : memref<8x2x32xbf16, #tpu.memory_space<vmem>>, vector<1x2x32xbf16>,
    %145 = arith.truncf %139 : vector<2x32xf32> to vector<2x32xbf16>
    %c5_i32 = arith.constant 5 : i32
    %146 = arith.index_cast %c5_i32 : i32 to index
    %c0_36 = arith.constant 0 : index
    %c0_37 = arith.constant 0 : index
    %147 = vector.load %arg1[%146, %c0_36, %c0_37] : memref<8x2x128xbf16, #tpu.memory_space<vmem>>, vector<1x2x128xbf16>
    %148 = vector.shape_cast %147 : vector<1x2x128xbf16> to vector<2x128xbf16>
    %149 = arith.extf %148 : vector<2x128xbf16> to vector<2x128xf32>
    %cst_38 = arith.constant dense<0.000000e+00> : vector<2x128xf32>
    %150 = tpu.matmul %145, %3, %cst_38 {dimension_numbers = #tpu.dot_dimension_numbers<[1], [0], [0], [1], [0, 0, 1, 1], [], []>} : vector<2x32xbf16>, vector<32x128xbf16>, vector<2x128xf32> -> vector<2x128xf32>
    %151 = arith.addf %149, %150 : vector<2x128xf32>
    %152 = vector.extract_strided_slice %151 {offsets = [0, 0], sizes = [2, 96], strides = [1, 1]} : vector<2x128xf32> to vector<2x96xf32>
    %153 = arith.negf %152 : vector<2x96xf32>
    %154 = math.exp %153 : vector<2x96xf32>
    %cst_39 = arith.constant 1.000000e+00 : f32
    %155 = vector.broadcast %cst_39 : f32 to vector<2x96xf32>
    %156 = arith.addf %155, %154 : vector<2x96xf32>
    %157 = arith.divf %155, %156 : vector<2x96xf32>
    %158 = vector.extract_strided_slice %151 {offsets = [0, 96], sizes = [2, 32], strides = [1, 1]} : vector<2x128xf32> to vector<2x32xf32>
    %159 = math.tanh %158 : vector<2x32xf32>
    %160 = vector.extract_strided_slice %157 {offsets = [0, 0], sizes = [2, 32], strides = [1, 1]} : vector<2x96xf32> to vector<2x32xf32>
    %161 = vector.extract_strided_slice %157 {offsets = [0, 32], sizes = [2, 32], strides = [1, 1]} : vector<2x96xf32> to vector<2x32xf32>
    %162 = vector.extract_strided_slice %157 {offsets = [0, 64], sizes = [2, 32], strides = [1, 1]} : vector<2x96xf32> to vector<2x32xf32>
    %163 = arith.mulf %161, %137 : vector<2x32xf32>
    %164 = arith.mulf %160, %159 : vector<2x32xf32>
    %165 = arith.addf %163, %164 : vector<2x32xf32>
    %166 = math.tanh %165 : vector<2x32xf32>
    %167 = arith.mulf %162, %166 : vector<2x32xf32>
    %168 = arith.truncf %167 : vector<2x32xf32> to vector<2x32xbf16>
    %169 = arith.index_cast %c5_i32 : i32 to index
    %c0_40 = arith.constant 0 : index
    %c0_41 = arith.constant 0 : index
    %170 = vector.load %arg3[%169, %c0_40, %c0_41] : memref<8x2x32xbf16, #tpu.memory_space<vmem>>, vector<1x2x32xbf16>
    %171 = vector.shape_cast %170 : vector<1x2x32xbf16> to vector<2x32xbf16>
    %172 = vector.shape_cast %168 : vector<2x32xbf16> to vector<1x2x32xbf16>
    tpu.vector_store %arg3[%169, %c0_40, %c0_41], %172 {strides = array<i32>} : memref<8x2x32xbf16, #tpu.memory_space<vmem>>, vector<1x2x32xbf16>,
    %173 = arith.truncf %167 : vector<2x32xf32> to vector<2x32xbf16>
    %c6_i32 = arith.constant 6 : i32
    %174 = arith.index_cast %c6_i32 : i32 to index
    %c0_42 = arith.constant 0 : index
    %c0_43 = arith.constant 0 : index
    %175 = vector.load %arg1[%174, %c0_42, %c0_43] : memref<8x2x128xbf16, #tpu.memory_space<vmem>>, vector<1x2x128xbf16>
    %176 = vector.shape_cast %175 : vector<1x2x128xbf16> to vector<2x128xbf16>
    %177 = arith.extf %176 : vector<2x128xbf16> to vector<2x128xf32>
    %cst_44 = arith.constant dense<0.000000e+00> : vector<2x128xf32>
    %178 = tpu.matmul %173, %3, %cst_44 {dimension_numbers = #tpu.dot_dimension_numbers<[1], [0], [0], [1], [0, 0, 1, 1], [], []>} : vector<2x32xbf16>, vector<32x128xbf16>, vector<2x128xf32> -> vector<2x128xf32>
    %179 = arith.addf %177, %178 : vector<2x128xf32>
    %180 = vector.extract_strided_slice %179 {offsets = [0, 0], sizes = [2, 96], strides = [1, 1]} : vector<2x128xf32> to vector<2x96xf32>
    %181 = arith.negf %180 : vector<2x96xf32>
    %182 = math.exp %181 : vector<2x96xf32>
    %cst_45 = arith.constant 1.000000e+00 : f32
    %183 = vector.broadcast %cst_45 : f32 to vector<2x96xf32>
    %184 = arith.addf %183, %182 : vector<2x96xf32>
    %185 = arith.divf %183, %184 : vector<2x96xf32>
    %186 = vector.extract_strided_slice %179 {offsets = [0, 96], sizes = [2, 32], strides = [1, 1]} : vector<2x128xf32> to vector<2x32xf32>
    %187 = math.tanh %186 : vector<2x32xf32>
    %188 = vector.extract_strided_slice %185 {offsets = [0, 0], sizes = [2, 32], strides = [1, 1]} : vector<2x96xf32> to vector<2x32xf32>
    %189 = vector.extract_strided_slice %185 {offsets = [0, 32], sizes = [2, 32], strides = [1, 1]} : vector<2x96xf32> to vector<2x32xf32>
    %190 = vector.extract_strided_slice %185 {offsets = [0, 64], sizes = [2, 32], strides = [1, 1]} : vector<2x96xf32> to vector<2x32xf32>
    %191 = arith.mulf %189, %165 : vector<2x32xf32>
    %192 = arith.mulf %188, %187 : vector<2x32xf32>
    %193 = arith.addf %191, %192 : vector<2x32xf32>
    %194 = math.tanh %193 : vector<2x32xf32>
    %195 = arith.mulf %190, %194 : vector<2x32xf32>
    %196 = arith.truncf %195 : vector<2x32xf32> to vector<2x32xbf16>
    %197 = arith.index_cast %c6_i32 : i32 to index
    %c0_46 = arith.constant 0 : index
    %c0_47 = arith.constant 0 : index
    %198 = vector.load %arg3[%197, %c0_46, %c0_47] : memref<8x2x32xbf16, #tpu.memory_space<vmem>>, vector<1x2x32xbf16>
    %199 = vector.shape_cast %198 : vector<1x2x32xbf16> to vector<2x32xbf16>
    %200 = vector.shape_cast %196 : vector<2x32xbf16> to vector<1x2x32xbf16>
    tpu.vector_store %arg3[%197, %c0_46, %c0_47], %200 {strides = array<i32>} : memref<8x2x32xbf16, #tpu.memory_space<vmem>>, vector<1x2x32xbf16>,
    %201 = arith.truncf %195 : vector<2x32xf32> to vector<2x32xbf16>
    %c7_i32 = arith.constant 7 : i32
    %202 = arith.index_cast %c7_i32 : i32 to index
    %c0_48 = arith.constant 0 : index
    %c0_49 = arith.constant 0 : index
    %203 = vector.load %arg1[%202, %c0_48, %c0_49] : memref<8x2x128xbf16, #tpu.memory_space<vmem>>, vector<1x2x128xbf16>
    %204 = vector.shape_cast %203 : vector<1x2x128xbf16> to vector<2x128xbf16>
    %205 = arith.extf %204 : vector<2x128xbf16> to vector<2x128xf32>
    %cst_50 = arith.constant dense<0.000000e+00> : vector<2x128xf32>
    %206 = tpu.matmul %201, %3, %cst_50 {dimension_numbers = #tpu.dot_dimension_numbers<[1], [0], [0], [1], [0, 0, 1, 1], [], []>} : vector<2x32xbf16>, vector<32x128xbf16>, vector<2x128xf32> -> vector<2x128xf32>
    %207 = arith.addf %205, %206 : vector<2x128xf32>
    %208 = vector.extract_strided_slice %207 {offsets = [0, 0], sizes = [2, 96], strides = [1, 1]} : vector<2x128xf32> to vector<2x96xf32>
    %209 = arith.negf %208 : vector<2x96xf32>
    %210 = math.exp %209 : vector<2x96xf32>
    %cst_51 = arith.constant 1.000000e+00 : f32
    %211 = vector.broadcast %cst_51 : f32 to vector<2x96xf32>
    %212 = arith.addf %211, %210 : vector<2x96xf32>
    %213 = arith.divf %211, %212 : vector<2x96xf32>
    %214 = vector.extract_strided_slice %207 {offsets = [0, 96], sizes = [2, 32], strides = [1, 1]} : vector<2x128xf32> to vector<2x32xf32>
    %215 = math.tanh %214 : vector<2x32xf32>
    %216 = vector.extract_strided_slice %213 {offsets = [0, 0], sizes = [2, 32], strides = [1, 1]} : vector<2x96xf32> to vector<2x32xf32>
    %217 = vector.extract_strided_slice %213 {offsets = [0, 32], sizes = [2, 32], strides = [1, 1]} : vector<2x96xf32> to vector<2x32xf32>
    %218 = vector.extract_strided_slice %213 {offsets = [0, 64], sizes = [2, 32], strides = [1, 1]} : vector<2x96xf32> to vector<2x32xf32>
    %219 = arith.mulf %217, %193 : vector<2x32xf32>
    %220 = arith.mulf %216, %215 : vector<2x32xf32>
    %221 = arith.addf %219, %220 : vector<2x32xf32>
    %222 = math.tanh %221 : vector<2x32xf32>
    %223 = arith.mulf %218, %222 : vector<2x32xf32>
    %224 = arith.truncf %223 : vector<2x32xf32> to vector<2x32xbf16>
    %225 = arith.index_cast %c7_i32 : i32 to index
    %c0_52 = arith.constant 0 : index
    %c0_53 = arith.constant 0 : index
    %226 = vector.load %arg3[%225, %c0_52, %c0_53] : memref<8x2x32xbf16, #tpu.memory_space<vmem>>, vector<1x2x32xbf16>
    %227 = vector.shape_cast %226 : vector<1x2x32xbf16> to vector<2x32xbf16>
    %228 = vector.shape_cast %224 : vector<2x32xbf16> to vector<1x2x32xbf16>
    tpu.vector_store %arg3[%225, %c0_52, %c0_53], %228 {strides = array<i32>} : memref<8x2x32xbf16, #tpu.memory_space<vmem>>, vector<1x2x32xbf16>,
    %229 = arith.truncf %223 : vector<2x32xf32> to vector<2x32xbf16>
    %c8_i32 = arith.constant 8 : i32
    %c0_54 = arith.constant 0 : index
    %c0_55 = arith.constant 0 : index
    %230 = vector.load %arg4[%c0_54, %c0_55] : memref<2x32xbf16, #tpu.memory_space<vmem>>, vector<2x32xbf16>
    tpu.vector_store %arg4[%c0_54, %c0_55], %229 {strides = array<i32>} : memref<2x32xbf16, #tpu.memory_space<vmem>>, vector<2x32xbf16>,
    %c0_56 = arith.constant 0 : index
    %c0_57 = arith.constant 0 : index
    %231 = vector.load %arg5[%c0_56, %c0_57] : memref<2x32xf32, #tpu.memory_space<vmem>>, vector<2x32xf32>
    tpu.vector_store %arg5[%c0_56, %c0_57], %221 {strides = array<i32>} : memref<2x32xf32, #tpu.memory_space<vmem>>, vector<2x32xf32>,
    return
  }
  func.func @transform_0(%arg0: i32) -> (i32, i32, i32) {
    %c0_i32 = arith.constant 0 : i32
    %c0_i32_0 = arith.constant 0 : i32
    %c0_i32_1 = arith.constant 0 : i32
    return %arg0, %c0_i32, %c0_i32_0 : i32, i32, i32
  }
  func.func @transform_1(%arg0: i32) -> (i32, i32) {
    %c0_i32 = arith.constant 0 : i32
    %c0_i32_0 = arith.constant 0 : i32
    %c0_i32_1 = arith.constant 0 : i32
    return %c0_i32, %c0_i32_0 : i32, i32
  }
  func.func @transform_2(%arg0: i32) -> (i32, i32, i32) {
    %c0_i32 = arith.constant 0 : i32
    %c0_i32_0 = arith.constant 0 : i32
    %c0_i32_1 = arith.constant 0 : i32
    return %arg0, %c0_i32, %c0_i32_0 : i32, i32, i32
  }
}

module attributes {stable_mosaic.version = 11 : i64} {
  func.func @_matmul_bias_kernel(%arg0: i32, %arg1: memref<16x32xbf16, #tpu.memory_space<vmem>>, %arg2: memref<32x128xbf16, #tpu.memory_space<vmem>>, %arg3: memref<1x128xf32, #tpu.memory_space<vmem>>, %arg4: memref<16x128xbf16, #tpu.memory_space<vmem>>) attributes {dimension_semantics = [#tpu.dimension_semantics<parallel>], iteration_bounds = array<i64: 1>, scalar_prefetch = 0 : i64, scratch_operands = 0 : i64, tpu.core_type = #tpu.core_type<tc>, window_params = [{transform_indices = @transform_0, window_bounds = array<i64: 16, 32>}, {pipeline_mode = #tpu.pipeline_mode<synchronous>, transform_indices = @transform_1, window_bounds = array<i64: 32, 128>}, {pipeline_mode = #tpu.pipeline_mode<synchronous>, transform_indices = @transform_2, window_bounds = array<i64: 1, 128>}, {transform_indices = @transform_3, window_bounds = array<i64: 16, 128>}]} {
    %c0 = arith.constant 0 : index
    %c0_0 = arith.constant 0 : index
    %0 = vector.load %arg1[%c0, %c0_0] : memref<16x32xbf16, #tpu.memory_space<vmem>>, vector<16x32xbf16>
    %c0_1 = arith.constant 0 : index
    %c0_2 = arith.constant 0 : index
    %1 = vector.load %arg2[%c0_1, %c0_2] : memref<32x128xbf16, #tpu.memory_space<vmem>>, vector<32x128xbf16>
    %cst = arith.constant dense<0.000000e+00> : vector<16x128xf32>
    %2 = tpu.matmul %0, %1, %cst {dimension_numbers = #tpu.dot_dimension_numbers<[1], [0], [0], [1], [0, 0, 1, 1], [], []>} : vector<16x32xbf16>, vector<32x128xbf16>, vector<16x128xf32> -> vector<16x128xf32>
    %c0_3 = arith.constant 0 : index
    %c0_4 = arith.constant 0 : index
    %3 = vector.load %arg3[%c0_3, %c0_4] : memref<1x128xf32, #tpu.memory_space<vmem>>, vector<1x128xf32>
    %4 = vector.broadcast %3 : vector<1x128xf32> to vector<16x128xf32>
    %5 = arith.addf %2, %4 : vector<16x128xf32>
    %6 = arith.truncf %5 : vector<16x128xf32> to vector<16x128xbf16>
    %c0_5 = arith.constant 0 : index
    %c0_6 = arith.constant 0 : index
    %7 = vector.load %arg4[%c0_5, %c0_6] : memref<16x128xbf16, #tpu.memory_space<vmem>>, vector<16x128xbf16>
    tpu.vector_store %arg4[%c0_5, %c0_6], %6 {strides = array<i32>} : memref<16x128xbf16, #tpu.memory_space<vmem>>, vector<16x128xbf16>,
    return
  }
  func.func @transform_0(%arg0: i32) -> (i32, i32) {
    %c0_i32 = arith.constant 0 : i32
    %c0_i32_0 = arith.constant 0 : i32
    return %arg0, %c0_i32 : i32, i32
  }
  func.func @transform_1(%arg0: i32) -> (i32, i32) {
    %c0_i32 = arith.constant 0 : i32
    %c0_i32_0 = arith.constant 0 : i32
    %c0_i32_1 = arith.constant 0 : i32
    return %c0_i32, %c0_i32_0 : i32, i32
  }
  func.func @transform_2(%arg0: i32) -> (i32, i32) {
    %c0_i32 = arith.constant 0 : i32
    %c0_i32_0 = arith.constant 0 : i32
    %c0_i32_1 = arith.constant 0 : i32
    return %c0_i32, %c0_i32_0 : i32, i32
  }
  func.func @transform_3(%arg0: i32) -> (i32, i32) {
    %c0_i32 = arith.constant 0 : i32
    %c0_i32_0 = arith.constant 0 : i32
    return %arg0, %c0_i32 : i32, i32
  }
}

module attributes {stable_mosaic.version = 11 : i64} {
  func.func @_lstm_chunk_fc_kernel(%arg0: i32, %arg1: memref<8x2x128xbf16, #tpu.memory_space<vmem>>, %arg2: memref<32x128xbf16, #tpu.memory_space<vmem>>, %arg3: memref<32x128xbf16, #tpu.memory_space<vmem>>, %arg4: memref<1x128xf32, #tpu.memory_space<vmem>>, %arg5: memref<8x2x128xf32, #tpu.memory_space<vmem>>, %arg6: memref<2x32xbf16, #tpu.memory_space<vmem>>, %arg7: memref<2x32xf32, #tpu.memory_space<vmem>>) attributes {dimension_semantics = [#tpu.dimension_semantics<arbitrary>], iteration_bounds = array<i64: 1>, scalar_prefetch = 0 : i64, scratch_operands = 2 : i64, tpu.core_type = #tpu.core_type<tc>, window_params = [{transform_indices = @transform_0, window_bounds = array<i64: 8, 2, 128>}, {pipeline_mode = #tpu.pipeline_mode<synchronous>, transform_indices = @transform_1, window_bounds = array<i64: 32, 128>}, {pipeline_mode = #tpu.pipeline_mode<synchronous>, transform_indices = @transform_2, window_bounds = array<i64: 32, 128>}, {pipeline_mode = #tpu.pipeline_mode<synchronous>, transform_indices = @transform_3, window_bounds = array<i64: 1, 128>}, {transform_indices = @transform_4, window_bounds = array<i64: 8, 2, 128>}]} {
    %c0_i32 = arith.constant 0 : i32
    %0 = arith.cmpi eq, %arg0, %c0_i32 : i32
    %1 = arith.extui %0 : i1 to i32
    %c0_i32_0 = arith.constant 0 : i32
    %2 = arith.cmpi ne, %1, %c0_i32_0 : i32
    scf.if %2 {
      %cst_70 = arith.constant 0.000000e+00 : bf16
      %250 = vector.broadcast %cst_70 : bf16 to vector<2x32xbf16>
      %c0_71 = arith.constant 0 : index
      %c0_72 = arith.constant 0 : index
      %251 = vector.load %arg6[%c0_71, %c0_72] : memref<2x32xbf16, #tpu.memory_space<vmem>>, vector<2x32xbf16>
      tpu.vector_store %arg6[%c0_71, %c0_72], %250 {strides = array<i32>} : memref<2x32xbf16, #tpu.memory_space<vmem>>, vector<2x32xbf16>,
      %cst_73 = arith.constant 0.000000e+00 : f32
      %252 = vector.broadcast %cst_73 : f32 to vector<2x32xf32>
      %c0_74 = arith.constant 0 : index
      %c0_75 = arith.constant 0 : index
      %253 = vector.load %arg7[%c0_74, %c0_75] : memref<2x32xf32, #tpu.memory_space<vmem>>, vector<2x32xf32>
      tpu.vector_store %arg7[%c0_74, %c0_75], %252 {strides = array<i32>} : memref<2x32xf32, #tpu.memory_space<vmem>>, vector<2x32xf32>,
    } else {
    }
    %c0 = arith.constant 0 : index
    %c0_1 = arith.constant 0 : index
    %3 = vector.load %arg2[%c0, %c0_1] : memref<32x128xbf16, #tpu.memory_space<vmem>>, vector<32x128xbf16>
    %c0_2 = arith.constant 0 : index
    %c0_3 = arith.constant 0 : index
    %4 = vector.load %arg3[%c0_2, %c0_3] : memref<32x128xbf16, #tpu.memory_space<vmem>>, vector<32x128xbf16>
    %c0_4 = arith.constant 0 : index
    %c0_5 = arith.constant 0 : index
    %5 = vector.load %arg4[%c0_4, %c0_5] : memref<1x128xf32, #tpu.memory_space<vmem>>, vector<1x128xf32>
    %c0_6 = arith.constant 0 : index
    %c0_7 = arith.constant 0 : index
    %6 = vector.load %arg6[%c0_6, %c0_7] : memref<2x32xbf16, #tpu.memory_space<vmem>>, vector<2x32xbf16>
    %c0_8 = arith.constant 0 : index
    %c0_9 = arith.constant 0 : index
    %7 = vector.load %arg7[%c0_8, %c0_9] : memref<2x32xf32, #tpu.memory_space<vmem>>, vector<2x32xf32>
    %c0_i32_10 = arith.constant 0 : i32
    %8 = arith.index_cast %c0_i32_10 : i32 to index
    %c0_11 = arith.constant 0 : index
    %c0_12 = arith.constant 0 : index
    %9 = vector.load %arg1[%8, %c0_11, %c0_12] : memref<8x2x128xbf16, #tpu.memory_space<vmem>>, vector<1x2x128xbf16>
    %10 = vector.shape_cast %9 : vector<1x2x128xbf16> to vector<2x128xbf16>
    %11 = arith.extf %10 : vector<2x128xbf16> to vector<2x128xf32>
    %cst = arith.constant dense<0.000000e+00> : vector<2x128xf32>
    %12 = tpu.matmul %6, %3, %cst {dimension_numbers = #tpu.dot_dimension_numbers<[1], [0], [0], [1], [0, 0, 1, 1], [], []>} : vector<2x32xbf16>, vector<32x128xbf16>, vector<2x128xf32> -> vector<2x128xf32>
    %13 = arith.addf %11, %12 : vector<2x128xf32>
    %14 = vector.extract_strided_slice %13 {offsets = [0, 0], sizes = [2, 96], strides = [1, 1]} : vector<2x128xf32> to vector<2x96xf32>
    %15 = arith.negf %14 : vector<2x96xf32>
    %16 = math.exp %15 : vector<2x96xf32>
    %cst_13 = arith.constant 1.000000e+00 : f32
    %17 = vector.broadcast %cst_13 : f32 to vector<2x96xf32>
    %18 = arith.addf %17, %16 : vector<2x96xf32>
    %19 = arith.divf %17, %18 : vector<2x96xf32>
    %20 = vector.extract_strided_slice %13 {offsets = [0, 96], sizes = [2, 32], strides = [1, 1]} : vector<2x128xf32> to vector<2x32xf32>
    %21 = math.tanh %20 : vector<2x32xf32>
    %22 = vector.extract_strided_slice %19 {offsets = [0, 0], sizes = [2, 32], strides = [1, 1]} : vector<2x96xf32> to vector<2x32xf32>
    %23 = vector.extract_strided_slice %19 {offsets = [0, 32], sizes = [2, 32], strides = [1, 1]} : vector<2x96xf32> to vector<2x32xf32>
    %24 = vector.extract_strided_slice %19 {offsets = [0, 64], sizes = [2, 32], strides = [1, 1]} : vector<2x96xf32> to vector<2x32xf32>
    %25 = arith.mulf %23, %7 : vector<2x32xf32>
    %26 = arith.mulf %22, %21 : vector<2x32xf32>
    %27 = arith.addf %25, %26 : vector<2x32xf32>
    %28 = math.tanh %27 : vector<2x32xf32>
    %29 = arith.mulf %24, %28 : vector<2x32xf32>
    %30 = arith.truncf %29 : vector<2x32xf32> to vector<2x32xbf16>
    %cst_14 = arith.constant dense<0.000000e+00> : vector<2x128xf32>
    %31 = tpu.matmul %30, %4, %cst_14 {dimension_numbers = #tpu.dot_dimension_numbers<[1], [0], [0], [1], [0, 0, 1, 1], [], []>} : vector<2x32xbf16>, vector<32x128xbf16>, vector<2x128xf32> -> vector<2x128xf32>
    %32 = vector.broadcast %5 : vector<1x128xf32> to vector<2x128xf32>
    %33 = arith.addf %31, %32 : vector<2x128xf32>
    %34 = arith.index_cast %c0_i32_10 : i32 to index
    %c0_15 = arith.constant 0 : index
    %c0_16 = arith.constant 0 : index
    %35 = vector.load %arg5[%34, %c0_15, %c0_16] : memref<8x2x128xf32, #tpu.memory_space<vmem>>, vector<1x2x128xf32>
    %36 = vector.shape_cast %35 : vector<1x2x128xf32> to vector<2x128xf32>
    %37 = vector.shape_cast %33 : vector<2x128xf32> to vector<1x2x128xf32>
    tpu.vector_store %arg5[%34, %c0_15, %c0_16], %37 {strides = array<i32>} : memref<8x2x128xf32, #tpu.memory_space<vmem>>, vector<1x2x128xf32>,
    %c1_i32 = arith.constant 1 : i32
    %38 = arith.index_cast %c1_i32 : i32 to index
    %c0_17 = arith.constant 0 : index
    %c0_18 = arith.constant 0 : index
    %39 = vector.load %arg1[%38, %c0_17, %c0_18] : memref<8x2x128xbf16, #tpu.memory_space<vmem>>, vector<1x2x128xbf16>
    %40 = vector.shape_cast %39 : vector<1x2x128xbf16> to vector<2x128xbf16>
    %41 = arith.extf %40 : vector<2x128xbf16> to vector<2x128xf32>
    %cst_19 = arith.constant dense<0.000000e+00> : vector<2x128xf32>
    %42 = tpu.matmul %30, %3, %cst_19 {dimension_numbers = #tpu.dot_dimension_numbers<[1], [0], [0], [1], [0, 0, 1, 1], [], []>} : vector<2x32xbf16>, vector<32x128xbf16>, vector<2x128xf32> -> vector<2x128xf32>
    %43 = arith.addf %41, %42 : vector<2x128xf32>
    %44 = vector.extract_strided_slice %43 {offsets = [0, 0], sizes = [2, 96], strides = [1, 1]} : vector<2x128xf32> to vector<2x96xf32>
    %45 = arith.negf %44 : vector<2x96xf32>
    %46 = math.exp %45 : vector<2x96xf32>
    %cst_20 = arith.constant 1.000000e+00 : f32
    %47 = vector.broadcast %cst_20 : f32 to vector<2x96xf32>
    %48 = arith.addf %47, %46 : vector<2x96xf32>
    %49 = arith.divf %47, %48 : vector<2x96xf32>
    %50 = vector.extract_strided_slice %43 {offsets = [0, 96], sizes = [2, 32], strides = [1, 1]} : vector<2x128xf32> to vector<2x32xf32>
    %51 = math.tanh %50 : vector<2x32xf32>
    %52 = vector.extract_strided_slice %49 {offsets = [0, 0], sizes = [2, 32], strides = [1, 1]} : vector<2x96xf32> to vector<2x32xf32>
    %53 = vector.extract_strided_slice %49 {offsets = [0, 32], sizes = [2, 32], strides = [1, 1]} : vector<2x96xf32> to vector<2x32xf32>
    %54 = vector.extract_strided_slice %49 {offsets = [0, 64], sizes = [2, 32], strides = [1, 1]} : vector<2x96xf32> to vector<2x32xf32>
    %55 = arith.mulf %53, %27 : vector<2x32xf32>
    %56 = arith.mulf %52, %51 : vector<2x32xf32>
    %57 = arith.addf %55, %56 : vector<2x32xf32>
    %58 = math.tanh %57 : vector<2x32xf32>
    %59 = arith.mulf %54, %58 : vector<2x32xf32>
    %60 = arith.truncf %59 : vector<2x32xf32> to vector<2x32xbf16>
    %cst_21 = arith.constant dense<0.000000e+00> : vector<2x128xf32>
    %61 = tpu.matmul %60, %4, %cst_21 {dimension_numbers = #tpu.dot_dimension_numbers<[1], [0], [0], [1], [0, 0, 1, 1], [], []>} : vector<2x32xbf16>, vector<32x128xbf16>, vector<2x128xf32> -> vector<2x128xf32>
    %62 = vector.broadcast %5 : vector<1x128xf32> to vector<2x128xf32>
    %63 = arith.addf %61, %62 : vector<2x128xf32>
    %64 = arith.index_cast %c1_i32 : i32 to index
    %c0_22 = arith.constant 0 : index
    %c0_23 = arith.constant 0 : index
    %65 = vector.load %arg5[%64, %c0_22, %c0_23] : memref<8x2x128xf32, #tpu.memory_space<vmem>>, vector<1x2x128xf32>
    %66 = vector.shape_cast %65 : vector<1x2x128xf32> to vector<2x128xf32>
    %67 = vector.shape_cast %63 : vector<2x128xf32> to vector<1x2x128xf32>
    tpu.vector_store %arg5[%64, %c0_22, %c0_23], %67 {strides = array<i32>} : memref<8x2x128xf32, #tpu.memory_space<vmem>>, vector<1x2x128xf32>,
    %c2_i32 = arith.constant 2 : i32
    %68 = arith.index_cast %c2_i32 : i32 to index
    %c0_24 = arith.constant 0 : index
    %c0_25 = arith.constant 0 : index
    %69 = vector.load %arg1[%68, %c0_24, %c0_25] : memref<8x2x128xbf16, #tpu.memory_space<vmem>>, vector<1x2x128xbf16>
    %70 = vector.shape_cast %69 : vector<1x2x128xbf16> to vector<2x128xbf16>
    %71 = arith.extf %70 : vector<2x128xbf16> to vector<2x128xf32>
    %cst_26 = arith.constant dense<0.000000e+00> : vector<2x128xf32>
    %72 = tpu.matmul %60, %3, %cst_26 {dimension_numbers = #tpu.dot_dimension_numbers<[1], [0], [0], [1], [0, 0, 1, 1], [], []>} : vector<2x32xbf16>, vector<32x128xbf16>, vector<2x128xf32> -> vector<2x128xf32>
    %73 = arith.addf %71, %72 : vector<2x128xf32>
    %74 = vector.extract_strided_slice %73 {offsets = [0, 0], sizes = [2, 96], strides = [1, 1]} : vector<2x128xf32> to vector<2x96xf32>
    %75 = arith.negf %74 : vector<2x96xf32>
    %76 = math.exp %75 : vector<2x96xf32>
    %cst_27 = arith.constant 1.000000e+00 : f32
    %77 = vector.broadcast %cst_27 : f32 to vector<2x96xf32>
    %78 = arith.addf %77, %76 : vector<2x96xf32>
    %79 = arith.divf %77, %78 : vector<2x96xf32>
    %80 = vector.extract_strided_slice %73 {offsets = [0, 96], sizes = [2, 32], strides = [1, 1]} : vector<2x128xf32> to vector<2x32xf32>
    %81 = math.tanh %80 : vector<2x32xf32>
    %82 = vector.extract_strided_slice %79 {offsets = [0, 0], sizes = [2, 32], strides = [1, 1]} : vector<2x96xf32> to vector<2x32xf32>
    %83 = vector.extract_strided_slice %79 {offsets = [0, 32], sizes = [2, 32], strides = [1, 1]} : vector<2x96xf32> to vector<2x32xf32>
    %84 = vector.extract_strided_slice %79 {offsets = [0, 64], sizes = [2, 32], strides = [1, 1]} : vector<2x96xf32> to vector<2x32xf32>
    %85 = arith.mulf %83, %57 : vector<2x32xf32>
    %86 = arith.mulf %82, %81 : vector<2x32xf32>
    %87 = arith.addf %85, %86 : vector<2x32xf32>
    %88 = math.tanh %87 : vector<2x32xf32>
    %89 = arith.mulf %84, %88 : vector<2x32xf32>
    %90 = arith.truncf %89 : vector<2x32xf32> to vector<2x32xbf16>
    %cst_28 = arith.constant dense<0.000000e+00> : vector<2x128xf32>
    %91 = tpu.matmul %90, %4, %cst_28 {dimension_numbers = #tpu.dot_dimension_numbers<[1], [0], [0], [1], [0, 0, 1, 1], [], []>} : vector<2x32xbf16>, vector<32x128xbf16>, vector<2x128xf32> -> vector<2x128xf32>
    %92 = vector.broadcast %5 : vector<1x128xf32> to vector<2x128xf32>
    %93 = arith.addf %91, %92 : vector<2x128xf32>
    %94 = arith.index_cast %c2_i32 : i32 to index
    %c0_29 = arith.constant 0 : index
    %c0_30 = arith.constant 0 : index
    %95 = vector.load %arg5[%94, %c0_29, %c0_30] : memref<8x2x128xf32, #tpu.memory_space<vmem>>, vector<1x2x128xf32>
    %96 = vector.shape_cast %95 : vector<1x2x128xf32> to vector<2x128xf32>
    %97 = vector.shape_cast %93 : vector<2x128xf32> to vector<1x2x128xf32>
    tpu.vector_store %arg5[%94, %c0_29, %c0_30], %97 {strides = array<i32>} : memref<8x2x128xf32, #tpu.memory_space<vmem>>, vector<1x2x128xf32>,
    %c3_i32 = arith.constant 3 : i32
    %98 = arith.index_cast %c3_i32 : i32 to index
    %c0_31 = arith.constant 0 : index
    %c0_32 = arith.constant 0 : index
    %99 = vector.load %arg1[%98, %c0_31, %c0_32] : memref<8x2x128xbf16, #tpu.memory_space<vmem>>, vector<1x2x128xbf16>
    %100 = vector.shape_cast %99 : vector<1x2x128xbf16> to vector<2x128xbf16>
    %101 = arith.extf %100 : vector<2x128xbf16> to vector<2x128xf32>
    %cst_33 = arith.constant dense<0.000000e+00> : vector<2x128xf32>
    %102 = tpu.matmul %90, %3, %cst_33 {dimension_numbers = #tpu.dot_dimension_numbers<[1], [0], [0], [1], [0, 0, 1, 1], [], []>} : vector<2x32xbf16>, vector<32x128xbf16>, vector<2x128xf32> -> vector<2x128xf32>
    %103 = arith.addf %101, %102 : vector<2x128xf32>
    %104 = vector.extract_strided_slice %103 {offsets = [0, 0], sizes = [2, 96], strides = [1, 1]} : vector<2x128xf32> to vector<2x96xf32>
    %105 = arith.negf %104 : vector<2x96xf32>
    %106 = math.exp %105 : vector<2x96xf32>
    %cst_34 = arith.constant 1.000000e+00 : f32
    %107 = vector.broadcast %cst_34 : f32 to vector<2x96xf32>
    %108 = arith.addf %107, %106 : vector<2x96xf32>
    %109 = arith.divf %107, %108 : vector<2x96xf32>
    %110 = vector.extract_strided_slice %103 {offsets = [0, 96], sizes = [2, 32], strides = [1, 1]} : vector<2x128xf32> to vector<2x32xf32>
    %111 = math.tanh %110 : vector<2x32xf32>
    %112 = vector.extract_strided_slice %109 {offsets = [0, 0], sizes = [2, 32], strides = [1, 1]} : vector<2x96xf32> to vector<2x32xf32>
    %113 = vector.extract_strided_slice %109 {offsets = [0, 32], sizes = [2, 32], strides = [1, 1]} : vector<2x96xf32> to vector<2x32xf32>
    %114 = vector.extract_strided_slice %109 {offsets = [0, 64], sizes = [2, 32], strides = [1, 1]} : vector<2x96xf32> to vector<2x32xf32>
    %115 = arith.mulf %113, %87 : vector<2x32xf32>
    %116 = arith.mulf %112, %111 : vector<2x32xf32>
    %117 = arith.addf %115, %116 : vector<2x32xf32>
    %118 = math.tanh %117 : vector<2x32xf32>
    %119 = arith.mulf %114, %118 : vector<2x32xf32>
    %120 = arith.truncf %119 : vector<2x32xf32> to vector<2x32xbf16>
    %cst_35 = arith.constant dense<0.000000e+00> : vector<2x128xf32>
    %121 = tpu.matmul %120, %4, %cst_35 {dimension_numbers = #tpu.dot_dimension_numbers<[1], [0], [0], [1], [0, 0, 1, 1], [], []>} : vector<2x32xbf16>, vector<32x128xbf16>, vector<2x128xf32> -> vector<2x128xf32>
    %122 = vector.broadcast %5 : vector<1x128xf32> to vector<2x128xf32>
    %123 = arith.addf %121, %122 : vector<2x128xf32>
    %124 = arith.index_cast %c3_i32 : i32 to index
    %c0_36 = arith.constant 0 : index
    %c0_37 = arith.constant 0 : index
    %125 = vector.load %arg5[%124, %c0_36, %c0_37] : memref<8x2x128xf32, #tpu.memory_space<vmem>>, vector<1x2x128xf32>
    %126 = vector.shape_cast %125 : vector<1x2x128xf32> to vector<2x128xf32>
    %127 = vector.shape_cast %123 : vector<2x128xf32> to vector<1x2x128xf32>
    tpu.vector_store %arg5[%124, %c0_36, %c0_37], %127 {strides = array<i32>} : memref<8x2x128xf32, #tpu.memory_space<vmem>>, vector<1x2x128xf32>,
    %c4_i32 = arith.constant 4 : i32
    %128 = arith.index_cast %c4_i32 : i32 to index
    %c0_38 = arith.constant 0 : index
    %c0_39 = arith.constant 0 : index
    %129 = vector.load %arg1[%128, %c0_38, %c0_39] : memref<8x2x128xbf16, #tpu.memory_space<vmem>>, vector<1x2x128xbf16>
    %130 = vector.shape_cast %129 : vector<1x2x128xbf16> to vector<2x128xbf16>
    %131 = arith.extf %130 : vector<2x128xbf16> to vector<2x128xf32>
    %cst_40 = arith.constant dense<0.000000e+00> : vector<2x128xf32>
    %132 = tpu.matmul %120, %3, %cst_40 {dimension_numbers = #tpu.dot_dimension_numbers<[1], [0], [0], [1], [0, 0, 1, 1], [], []>} : vector<2x32xbf16>, vector<32x128xbf16>, vector<2x128xf32> -> vector<2x128xf32>
    %133 = arith.addf %131, %132 : vector<2x128xf32>
    %134 = vector.extract_strided_slice %133 {offsets = [0, 0], sizes = [2, 96], strides = [1, 1]} : vector<2x128xf32> to vector<2x96xf32>
    %135 = arith.negf %134 : vector<2x96xf32>
    %136 = math.exp %135 : vector<2x96xf32>
    %cst_41 = arith.constant 1.000000e+00 : f32
    %137 = vector.broadcast %cst_41 : f32 to vector<2x96xf32>
    %138 = arith.addf %137, %136 : vector<2x96xf32>
    %139 = arith.divf %137, %138 : vector<2x96xf32>
    %140 = vector.extract_strided_slice %133 {offsets = [0, 96], sizes = [2, 32], strides = [1, 1]} : vector<2x128xf32> to vector<2x32xf32>
    %141 = math.tanh %140 : vector<2x32xf32>
    %142 = vector.extract_strided_slice %139 {offsets = [0, 0], sizes = [2, 32], strides = [1, 1]} : vector<2x96xf32> to vector<2x32xf32>
    %143 = vector.extract_strided_slice %139 {offsets = [0, 32], sizes = [2, 32], strides = [1, 1]} : vector<2x96xf32> to vector<2x32xf32>
    %144 = vector.extract_strided_slice %139 {offsets = [0, 64], sizes = [2, 32], strides = [1, 1]} : vector<2x96xf32> to vector<2x32xf32>
    %145 = arith.mulf %143, %117 : vector<2x32xf32>
    %146 = arith.mulf %142, %141 : vector<2x32xf32>
    %147 = arith.addf %145, %146 : vector<2x32xf32>
    %148 = math.tanh %147 : vector<2x32xf32>
    %149 = arith.mulf %144, %148 : vector<2x32xf32>
    %150 = arith.truncf %149 : vector<2x32xf32> to vector<2x32xbf16>
    %cst_42 = arith.constant dense<0.000000e+00> : vector<2x128xf32>
    %151 = tpu.matmul %150, %4, %cst_42 {dimension_numbers = #tpu.dot_dimension_numbers<[1], [0], [0], [1], [0, 0, 1, 1], [], []>} : vector<2x32xbf16>, vector<32x128xbf16>, vector<2x128xf32> -> vector<2x128xf32>
    %152 = vector.broadcast %5 : vector<1x128xf32> to vector<2x128xf32>
    %153 = arith.addf %151, %152 : vector<2x128xf32>
    %154 = arith.index_cast %c4_i32 : i32 to index
    %c0_43 = arith.constant 0 : index
    %c0_44 = arith.constant 0 : index
    %155 = vector.load %arg5[%154, %c0_43, %c0_44] : memref<8x2x128xf32, #tpu.memory_space<vmem>>, vector<1x2x128xf32>
    %156 = vector.shape_cast %155 : vector<1x2x128xf32> to vector<2x128xf32>
    %157 = vector.shape_cast %153 : vector<2x128xf32> to vector<1x2x128xf32>
    tpu.vector_store %arg5[%154, %c0_43, %c0_44], %157 {strides = array<i32>} : memref<8x2x128xf32, #tpu.memory_space<vmem>>, vector<1x2x128xf32>,
    %c5_i32 = arith.constant 5 : i32
    %158 = arith.index_cast %c5_i32 : i32 to index
    %c0_45 = arith.constant 0 : index
    %c0_46 = arith.constant 0 : index
    %159 = vector.load %arg1[%158, %c0_45, %c0_46] : memref<8x2x128xbf16, #tpu.memory_space<vmem>>, vector<1x2x128xbf16>
    %160 = vector.shape_cast %159 : vector<1x2x128xbf16> to vector<2x128xbf16>
    %161 = arith.extf %160 : vector<2x128xbf16> to vector<2x128xf32>
    %cst_47 = arith.constant dense<0.000000e+00> : vector<2x128xf32>
    %162 = tpu.matmul %150, %3, %cst_47 {dimension_numbers = #tpu.dot_dimension_numbers<[1], [0], [0], [1], [0, 0, 1, 1], [], []>} : vector<2x32xbf16>, vector<32x128xbf16>, vector<2x128xf32> -> vector<2x128xf32>
    %163 = arith.addf %161, %162 : vector<2x128xf32>
    %164 = vector.extract_strided_slice %163 {offsets = [0, 0], sizes = [2, 96], strides = [1, 1]} : vector<2x128xf32> to vector<2x96xf32>
    %165 = arith.negf %164 : vector<2x96xf32>
    %166 = math.exp %165 : vector<2x96xf32>
    %cst_48 = arith.constant 1.000000e+00 : f32
    %167 = vector.broadcast %cst_48 : f32 to vector<2x96xf32>
    %168 = arith.addf %167, %166 : vector<2x96xf32>
    %169 = arith.divf %167, %168 : vector<2x96xf32>
    %170 = vector.extract_strided_slice %163 {offsets = [0, 96], sizes = [2, 32], strides = [1, 1]} : vector<2x128xf32> to vector<2x32xf32>
    %171 = math.tanh %170 : vector<2x32xf32>
    %172 = vector.extract_strided_slice %169 {offsets = [0, 0], sizes = [2, 32], strides = [1, 1]} : vector<2x96xf32> to vector<2x32xf32>
    %173 = vector.extract_strided_slice %169 {offsets = [0, 32], sizes = [2, 32], strides = [1, 1]} : vector<2x96xf32> to vector<2x32xf32>
    %174 = vector.extract_strided_slice %169 {offsets = [0, 64], sizes = [2, 32], strides = [1, 1]} : vector<2x96xf32> to vector<2x32xf32>
    %175 = arith.mulf %173, %147 : vector<2x32xf32>
    %176 = arith.mulf %172, %171 : vector<2x32xf32>
    %177 = arith.addf %175, %176 : vector<2x32xf32>
    %178 = math.tanh %177 : vector<2x32xf32>
    %179 = arith.mulf %174, %178 : vector<2x32xf32>
    %180 = arith.truncf %179 : vector<2x32xf32> to vector<2x32xbf16>
    %cst_49 = arith.constant dense<0.000000e+00> : vector<2x128xf32>
    %181 = tpu.matmul %180, %4, %cst_49 {dimension_numbers = #tpu.dot_dimension_numbers<[1], [0], [0], [1], [0, 0, 1, 1], [], []>} : vector<2x32xbf16>, vector<32x128xbf16>, vector<2x128xf32> -> vector<2x128xf32>
    %182 = vector.broadcast %5 : vector<1x128xf32> to vector<2x128xf32>
    %183 = arith.addf %181, %182 : vector<2x128xf32>
    %184 = arith.index_cast %c5_i32 : i32 to index
    %c0_50 = arith.constant 0 : index
    %c0_51 = arith.constant 0 : index
    %185 = vector.load %arg5[%184, %c0_50, %c0_51] : memref<8x2x128xf32, #tpu.memory_space<vmem>>, vector<1x2x128xf32>
    %186 = vector.shape_cast %185 : vector<1x2x128xf32> to vector<2x128xf32>
    %187 = vector.shape_cast %183 : vector<2x128xf32> to vector<1x2x128xf32>
    tpu.vector_store %arg5[%184, %c0_50, %c0_51], %187 {strides = array<i32>} : memref<8x2x128xf32, #tpu.memory_space<vmem>>, vector<1x2x128xf32>,
    %c6_i32 = arith.constant 6 : i32
    %188 = arith.index_cast %c6_i32 : i32 to index
    %c0_52 = arith.constant 0 : index
    %c0_53 = arith.constant 0 : index
    %189 = vector.load %arg1[%188, %c0_52, %c0_53] : memref<8x2x128xbf16, #tpu.memory_space<vmem>>, vector<1x2x128xbf16>
    %190 = vector.shape_cast %189 : vector<1x2x128xbf16> to vector<2x128xbf16>
    %191 = arith.extf %190 : vector<2x128xbf16> to vector<2x128xf32>
    %cst_54 = arith.constant dense<0.000000e+00> : vector<2x128xf32>
    %192 = tpu.matmul %180, %3, %cst_54 {dimension_numbers = #tpu.dot_dimension_numbers<[1], [0], [0], [1], [0, 0, 1, 1], [], []>} : vector<2x32xbf16>, vector<32x128xbf16>, vector<2x128xf32> -> vector<2x128xf32>
    %193 = arith.addf %191, %192 : vector<2x128xf32>
    %194 = vector.extract_strided_slice %193 {offsets = [0, 0], sizes = [2, 96], strides = [1, 1]} : vector<2x128xf32> to vector<2x96xf32>
    %195 = arith.negf %194 : vector<2x96xf32>
    %196 = math.exp %195 : vector<2x96xf32>
    %cst_55 = arith.constant 1.000000e+00 : f32
    %197 = vector.broadcast %cst_55 : f32 to vector<2x96xf32>
    %198 = arith.addf %197, %196 : vector<2x96xf32>
    %199 = arith.divf %197, %198 : vector<2x96xf32>
    %200 = vector.extract_strided_slice %193 {offsets = [0, 96], sizes = [2, 32], strides = [1, 1]} : vector<2x128xf32> to vector<2x32xf32>
    %201 = math.tanh %200 : vector<2x32xf32>
    %202 = vector.extract_strided_slice %199 {offsets = [0, 0], sizes = [2, 32], strides = [1, 1]} : vector<2x96xf32> to vector<2x32xf32>
    %203 = vector.extract_strided_slice %199 {offsets = [0, 32], sizes = [2, 32], strides = [1, 1]} : vector<2x96xf32> to vector<2x32xf32>
    %204 = vector.extract_strided_slice %199 {offsets = [0, 64], sizes = [2, 32], strides = [1, 1]} : vector<2x96xf32> to vector<2x32xf32>
    %205 = arith.mulf %203, %177 : vector<2x32xf32>
    %206 = arith.mulf %202, %201 : vector<2x32xf32>
    %207 = arith.addf %205, %206 : vector<2x32xf32>
    %208 = math.tanh %207 : vector<2x32xf32>
    %209 = arith.mulf %204, %208 : vector<2x32xf32>
    %210 = arith.truncf %209 : vector<2x32xf32> to vector<2x32xbf16>
    %cst_56 = arith.constant dense<0.000000e+00> : vector<2x128xf32>
    %211 = tpu.matmul %210, %4, %cst_56 {dimension_numbers = #tpu.dot_dimension_numbers<[1], [0], [0], [1], [0, 0, 1, 1], [], []>} : vector<2x32xbf16>, vector<32x128xbf16>, vector<2x128xf32> -> vector<2x128xf32>
    %212 = vector.broadcast %5 : vector<1x128xf32> to vector<2x128xf32>
    %213 = arith.addf %211, %212 : vector<2x128xf32>
    %214 = arith.index_cast %c6_i32 : i32 to index
    %c0_57 = arith.constant 0 : index
    %c0_58 = arith.constant 0 : index
    %215 = vector.load %arg5[%214, %c0_57, %c0_58] : memref<8x2x128xf32, #tpu.memory_space<vmem>>, vector<1x2x128xf32>
    %216 = vector.shape_cast %215 : vector<1x2x128xf32> to vector<2x128xf32>
    %217 = vector.shape_cast %213 : vector<2x128xf32> to vector<1x2x128xf32>
    tpu.vector_store %arg5[%214, %c0_57, %c0_58], %217 {strides = array<i32>} : memref<8x2x128xf32, #tpu.memory_space<vmem>>, vector<1x2x128xf32>,
    %c7_i32 = arith.constant 7 : i32
    %218 = arith.index_cast %c7_i32 : i32 to index
    %c0_59 = arith.constant 0 : index
    %c0_60 = arith.constant 0 : index
    %219 = vector.load %arg1[%218, %c0_59, %c0_60] : memref<8x2x128xbf16, #tpu.memory_space<vmem>>, vector<1x2x128xbf16>
    %220 = vector.shape_cast %219 : vector<1x2x128xbf16> to vector<2x128xbf16>
    %221 = arith.extf %220 : vector<2x128xbf16> to vector<2x128xf32>
    %cst_61 = arith.constant dense<0.000000e+00> : vector<2x128xf32>
    %222 = tpu.matmul %210, %3, %cst_61 {dimension_numbers = #tpu.dot_dimension_numbers<[1], [0], [0], [1], [0, 0, 1, 1], [], []>} : vector<2x32xbf16>, vector<32x128xbf16>, vector<2x128xf32> -> vector<2x128xf32>
    %223 = arith.addf %221, %222 : vector<2x128xf32>
    %224 = vector.extract_strided_slice %223 {offsets = [0, 0], sizes = [2, 96], strides = [1, 1]} : vector<2x128xf32> to vector<2x96xf32>
    %225 = arith.negf %224 : vector<2x96xf32>
    %226 = math.exp %225 : vector<2x96xf32>
    %cst_62 = arith.constant 1.000000e+00 : f32
    %227 = vector.broadcast %cst_62 : f32 to vector<2x96xf32>
    %228 = arith.addf %227, %226 : vector<2x96xf32>
    %229 = arith.divf %227, %228 : vector<2x96xf32>
    %230 = vector.extract_strided_slice %223 {offsets = [0, 96], sizes = [2, 32], strides = [1, 1]} : vector<2x128xf32> to vector<2x32xf32>
    %231 = math.tanh %230 : vector<2x32xf32>
    %232 = vector.extract_strided_slice %229 {offsets = [0, 0], sizes = [2, 32], strides = [1, 1]} : vector<2x96xf32> to vector<2x32xf32>
    %233 = vector.extract_strided_slice %229 {offsets = [0, 32], sizes = [2, 32], strides = [1, 1]} : vector<2x96xf32> to vector<2x32xf32>
    %234 = vector.extract_strided_slice %229 {offsets = [0, 64], sizes = [2, 32], strides = [1, 1]} : vector<2x96xf32> to vector<2x32xf32>
    %235 = arith.mulf %233, %207 : vector<2x32xf32>
    %236 = arith.mulf %232, %231 : vector<2x32xf32>
    %237 = arith.addf %235, %236 : vector<2x32xf32>
    %238 = math.tanh %237 : vector<2x32xf32>
    %239 = arith.mulf %234, %238 : vector<2x32xf32>
    %240 = arith.truncf %239 : vector<2x32xf32> to vector<2x32xbf16>
    %cst_63 = arith.constant dense<0.000000e+00> : vector<2x128xf32>
    %241 = tpu.matmul %240, %4, %cst_63 {dimension_numbers = #tpu.dot_dimension_numbers<[1], [0], [0], [1], [0, 0, 1, 1], [], []>} : vector<2x32xbf16>, vector<32x128xbf16>, vector<2x128xf32> -> vector<2x128xf32>
    %242 = vector.broadcast %5 : vector<1x128xf32> to vector<2x128xf32>
    %243 = arith.addf %241, %242 : vector<2x128xf32>
    %244 = arith.index_cast %c7_i32 : i32 to index
    %c0_64 = arith.constant 0 : index
    %c0_65 = arith.constant 0 : index
    %245 = vector.load %arg5[%244, %c0_64, %c0_65] : memref<8x2x128xf32, #tpu.memory_space<vmem>>, vector<1x2x128xf32>
    %246 = vector.shape_cast %245 : vector<1x2x128xf32> to vector<2x128xf32>
    %247 = vector.shape_cast %243 : vector<2x128xf32> to vector<1x2x128xf32>
    tpu.vector_store %arg5[%244, %c0_64, %c0_65], %247 {strides = array<i32>} : memref<8x2x128xf32, #tpu.memory_space<vmem>>, vector<1x2x128xf32>,
    %c8_i32 = arith.constant 8 : i32
    %c0_66 = arith.constant 0 : index
    %c0_67 = arith.constant 0 : index
    %248 = vector.load %arg6[%c0_66, %c0_67] : memref<2x32xbf16, #tpu.memory_space<vmem>>, vector<2x32xbf16>
    tpu.vector_store %arg6[%c0_66, %c0_67], %240 {strides = array<i32>} : memref<2x32xbf16, #tpu.memory_space<vmem>>, vector<2x32xbf16>,
    %c0_68 = arith.constant 0 : index
    %c0_69 = arith.constant 0 : index
    %249 = vector.load %arg7[%c0_68, %c0_69] : memref<2x32xf32, #tpu.memory_space<vmem>>, vector<2x32xf32>
    tpu.vector_store %arg7[%c0_68, %c0_69], %237 {strides = array<i32>} : memref<2x32xf32, #tpu.memory_space<vmem>>, vector<2x32xf32>,
    return
  }
  func.func @transform_0(%arg0: i32) -> (i32, i32, i32) {
    %c0_i32 = arith.constant 0 : i32
    %c0_i32_0 = arith.constant 0 : i32
    %c0_i32_1 = arith.constant 0 : i32
    return %arg0, %c0_i32, %c0_i32_0 : i32, i32, i32
  }
  func.func @transform_1(%arg0: i32) -> (i32, i32) {
    %c0_i32 = arith.constant 0 : i32
    %c0_i32_0 = arith.constant 0 : i32
    %c0_i32_1 = arith.constant 0 : i32
    return %c0_i32, %c0_i32_0 : i32, i32
  }
  func.func @transform_2(%arg0: i32) -> (i32, i32) {
    %c0_i32 = arith.constant 0 : i32
    %c0_i32_0 = arith.constant 0 : i32
    %c0_i32_1 = arith.constant 0 : i32
    return %c0_i32, %c0_i32_0 : i32, i32
  }
  func.func @transform_3(%arg0: i32) -> (i32, i32) {
    %c0_i32 = arith.constant 0 : i32
    %c0_i32_0 = arith.constant 0 : i32
    %c0_i32_1 = arith.constant 0 : i32
    return %c0_i32, %c0_i32_0 : i32, i32
  }
  func.func @transform_4(%arg0: i32) -> (i32, i32, i32) {
    %c0_i32 = arith.constant 0 : i32
    %c0_i32_0 = arith.constant 0 : i32
    %c0_i32_1 = arith.constant 0 : i32
    return %arg0, %c0_i32, %c0_i32_0 : i32, i32, i32
  }
}

</mosaic_0001>

<bundles_post_ra>
// kernel: lstm_model_forward.6
= control target key start
LH: loop header
LB: loop body
LE: loop exit
PB: predicated region body
PF: predicated region fallthrough
CT: control target
= control target key end

     0   :  { %v134_v0 = vmov 0.0   ;;  %vm135_vm0 = vmmov 0   ;;  %vm45_vm1 = vcmask 261120   ;;  %s171_s1 = inlined_call_operand.vmem [shape: bf16[32,128], index: 1, kind: input, shape index: {}]   ;;  %s172_s0 = inlined_call_operand.vmem [shape: bf16[16,32], index: 0, kind: input, shape index: {}]   ;;  %s173_s2 = inlined_call_operand.vmem [shape: f32[1,128], index: 2, kind: input, shape index: {}]   ;;  %s174_s3 = inlined_call_operand.vmem [shape: bf16[16,128], index: 3, kind: output, shape index: {}]  }
   0x1   :  { %121 = vmatprep.subr.bf16.mxu0 %v134_v0  ;;  %v131_v1 = vld [vmem:[%s171_s1 + $0x8] sm:$0xff]   ;;  %125 = vmatprep.mubr.msk.bf16.mxu0 %vm135_vm0, %v134_v0  ;;  %v132_v2 = vld [vmem:[%s171_s1] sm:$0xff]  }
   0x2   :  { %122 = vmatpush3.bf16.msra.mxu0 %v131_v1  ;;  %v133_v3 = vld [vmem:[%s172_s0] sm:$0xff]  }
   0x3   :  { %123 = vmatprep.subr.bf16.mxu0 %v134_v0  ;;  %v104_v5 = vld [vmem:[%s173_s2] ss:$0 sm:$0xff] }
   0x6   :  { %124 = vmatpush3.bf16.msra.mxu0 %v132_v2 }
   0x9   :  { %126 = vmatmul.mubr.msk.bf16.vlgmr.msra.gmra.mxu0 %vm45_vm1, %v133_v3 }
  0xc9   :  { %v83_v4 = vpop.f32.mrf.mxu0 }
  0xca   :  { %v84_v8 = vadd.f32 %v104_v5, %v83_v4 }
  0xcb   :  { %v127_v6 = vpop.f32.mrf.mxu0 }
  0xcd   :  { %v86_v7 = vpop.f32.mrf.mxu0 }
  0xce   :  { %v87_v9 = vadd.f32 %v104_v5, %v86_v7 }
  0xcf   :  { %v128_v10 = vpop.f32.mrf.mxu0 }
  0xd0   :  { %v116_v11 = vpack.c.bf16 %v87_v9, %v84_v8 }
  0xd2   :  { %117 = vst [vmem:[%s174_s3] sm:$0xff] %v116_v11  }

// kernel: lstm_model_forward.4
= control target key start
LH: loop header
LB: loop body
LE: loop exit
PB: predicated region body
PF: predicated region fallthrough
CT: control target
= control target key end

     0   :  { %v121_v0 = vmov 0.0   ;;  %vm122_vm0 = vmmov 0   ;;  %vm37_vm1 = vcmask 130048   ;;  %s155_s1 = inlined_call_operand.vmem [shape: bf16[16,128], index: 1, kind: input, shape index: {}]   ;;  %s156_s0 = inlined_call_operand.vmem [shape: bf16[16,16], index: 0, kind: input, shape index: {}]   ;;  %s157_s2 = inlined_call_operand.vmem [shape: f32[1,128], index: 2, kind: input, shape index: {}]   ;;  %s158_s3 = inlined_call_operand.vmem [shape: bf16[16,128], index: 3, kind: output, shape index: {}]  }
   0x1   :  { %111 = vmatprep.subr.bf16.mxu0 %v121_v0  ;;  %v119_v1 = vld [vmem:[%s155_s1] sm:$0xff]   ;;  %113 = vmatprep.mubr.msk.bf16.mxu0 %vm122_vm0, %v121_v0 }
   0x2   :  { %v120_v2 = vld [vmem:[%s156_s0] sm:$0xff]   ;;  %112 = vmatpush3.bf16.msra.mxu0 %v119_v1 }
   0x3   :  { %v96_v4 = vld [vmem:[%s157_s2] ss:$0 sm:$0xff] }
   0x5   :  { %114 = vmatmul.mubr.msk.bf16.vlgmr.msra.gmra.mxu0 %vm37_vm1, %v120_v2 }
  0xc5   :  { %v75_v3 = vpop.f32.mrf.mxu0 }
  0xc6   :  { %v76_v7 = vadd.f32 %v96_v4, %v75_v3 }
  0xc7   :  { %v115_v5 = vpop.f32.mrf.mxu0 }
  0xc9   :  { %v78_v6 = vpop.f32.mrf.mxu0 }
  0xca   :  { %v79_v8 = vadd.f32 %v96_v4, %v78_v6 }
  0xcb   :  { %v116_v9 = vpop.f32.mrf.mxu0 }
  0xcc   :  { %v107_v10 = vpack.c.bf16 %v79_v8, %v76_v7 }
  0xce   :  { %108 = vst [vmem:[%s158_s3] sm:$0xff] %v107_v10  }

// kernel: lstm_model_forward.5
= control target key start
LH: loop header
LB: loop body
LE: loop exit
PB: predicated region body
PF: predicated region fallthrough
CT: control target
= control target key end

     0   :  { %vm16_vm0 = vcmask 253952   ;;  %v1012_v0 = vmov 0.0   ;;  %vm1013_vm1 = vmmov 0   ;;  %v1014_v2 = vmov 0   ;;  %s1015_s14 = smov 32   ;;  %s1016_s15 = smov 64   ;;  %s1226_s1 = inlined_call_operand.vmem [shape: bf16[32,128], index: 1, kind: input, shape index: {}]   ;;  %s1227_s0 = inlined_call_operand.vmem [shape: bf16[8,2,128], index: 0, kind: input, shape index: {}]   ;;  %s1228_s2 = inlined_call_operand.vmem [shape: bf16[8,2,32], index: 2, kind: output, shape index: {}]  }
   0x1   :  { %874 = vmatprep.subr.bf16.mxu0 %v1012_v0  ;;  %v1039_v1 = vld [vmem:[%s1226_s1 + $0x8] sm:$0xff]   ;;  %878 = vmatprep.mubr.msk.bf16.mxu0 %vm1013_vm1, %v1012_v0  ;;  %17 = vst.msk [vmem:[#allocation2] sm:$0x1] %vm16_vm0, %v1014_v2  ;;  %v1051_v3 = vld [vmem:[%s1226_s1] sm:$0xff]   ;;  %vm40_vm2 = vcmask 261120   ;;  %vm18_vm3 = vcmask 254976  }
   0x2   :  { %882 = vmatprep.subr.bf16.mxu1 %v1012_v0  ;;  %886 = vmatprep.mubr.msk.bf16.mxu1 %vm1013_vm1, %v1012_v0  ;;  %19 = vst.msk [vmem:[#allocation3] sm:$0x3] %vm18_vm3, %v1012_v0  ;;  %v26_v5 = vld [vmem:[%s1227_s0] sm:$0x1]  ;;  %v822_v29 = vld [vmem:[%s1227_s0 + $0x1] sm:$0x1] }
   0x3   :  { %875 = vmatpush3.bf16.msra.mxu0 %v1039_v1  ;;  %883 = vmatpush3.bf16.msra.mxu1 %v1039_v1  ;;  %v27_v6 = vunpack.c.l.bf16 %v26_v5  ;;  %v143_v30 = vunpack.c.l.bf16 %v822_v29  ;;  %v826_v51 = vld [vmem:[%s1227_s0 + $0x2] sm:$0x1]  ;;  %s1019_s3 = smov 96  }
   0x4   :  { %876 = vmatprep.subr.bf16.mxu0 %v1012_v0  ;;  %884 = vmatprep.subr.bf16.mxu1 %v1012_v0  ;;  %v237_v52 = vunpack.c.l.bf16 %v826_v51 }
   0x7   :  { %877 = vmatpush3.bf16.msra.mxu0 %v1051_v3  ;;  %885 = vmatpush3.bf16.msra.mxu1 %v1051_v3 }
   0x8   :  { %v24_v4 = vld [vmem:[#allocation2] sm:$0x1]  ;;  %890 = vmatprep.subr.bf16.mxu0 %v1012_v0  ;;  %898 = vmatprep.subr.bf16.mxu1 %v1012_v0 }
   0x9   :  { %v821_v13 = vld.sshfl [vmem:[#allocation3] sm:$0x3 pattern:$0x76325410] }
   0xa   :  { %879 = vmatmul.mubr.msk.bf16.vlgmr.msra.gmra.mxu0 %vm40_vm2, %v24_v4 }
   0xb   :  { %891 = vmatpush3.bf16.msra.mxu0 %v1039_v1  ;;  %894 = vmatprep.mubr.msk.bf16.mxu0 %vm1013_vm1, %v1012_v0 }
   0xc   :  { %892 = vmatprep.subr.bf16.mxu0 %v1012_v0 }
   0xf   :  { %893 = vmatpush3.bf16.msra.mxu0 %v1051_v3 }
  0x10   :  { %906 = vmatprep.subr.bf16.mxu0 %v1012_v0 }
  0xca   :  { %v78_v7 = vpop.f32.mrf.mxu0 }
  0xcb   :  { %v84_v8 = vadd.f32 %v78_v7, %v27_v6 }
  0xcc   :  { %v880_v9 = vpop.f32.mrf.mxu0 }
  0xcd   :  { %948 = vtanh.f32 %v84_v8  ;;  %v820_v14 = vmul.f32 -1.442695, %v84_v8 }
  0xce   :  { %v81_v10 = vpop.f32.mrf.mxu0 }
  0xcf   :  { %950 = vpow2.f32 %v820_v14 }
  0xd0   :  { %v881_v11 = vpop.f32.mrf.mxu0 }
  0xda   :  { %v949_v12 = vpop.eup %948 }
  0xdb   :  { %105 = vrot.lane.b32.xlu0 %v949_v12, %s1015_s14  ;;  %v830_v12 = vld [vmem:[%s1227_s0 + $0x3] sm:$0x1] }
  0xdc   :  { %v951_v15 = vpop.eup %950 }
  0xdd   :  { %v88_v16 = vadd.f32 1.0, %v951_v15 }
  0xdf   :  { %100 = vrot.lane.b32.xlu0 %v821_v13, %s1015_s14  ;;  %952 = vrcp.f32 %v88_v16  ;;  %v331_v13 = vunpack.c.l.bf16 %v830_v12 }
  0xec   :  { %v953_v17 = vpop.eup %952 }
 0x14d   :  { %v106_v18 = vpop.permute.xlu0 %105 }
 0x14e   :  { %v108_v19 = vmul.f32 %v953_v17, %v106_v18 }
 0x150   :  { %110 = vrot.lane.b32.xlu1 %v108_v19, %s1015_s14 }
 0x151   :  { %v101_v20 = vpop.permute.xlu0 %100 }
 0x152   :  { %v103_v21 = vmul.f32 %v953_v17, %v101_v20 }
 0x1c2   :  { %v111_v22 = vpop.permute.xlu1 %110 }
 0x1c3   :  { %v113_v23 = vadd.f32 %v111_v22, %v103_v21 }
 0x1c5   :  { %954 = vtanh.f32 %v113_v23 }
 0x1d2   :  { %v955_v24 = vpop.eup %954 }
 0x1d3   :  { %116 = vrot.lane.b32.xlu1 %v955_v24, %s1015_s14 }
 0x245   :  { %v117_v25 = vpop.permute.xlu1 %116 }
 0x246   :  { %v119_v26 = vmul.f32 %v953_v17, %v117_v25 }
 0x248   :  { %v1076_v27 = vpack.c.bf16 %v119_v26, %v119_v26 }
 0x24a   :  { %144 = vrot.lane.b32.xlu0 %v1076_v27, %s1016_s15 }
 0x2bc   :  { %v145_v28 = vpop.permute.xlu0 %144 }
 0x2bd   :  { %887 = vmatmul.mubr.msk.bf16.vlgmr.msra.gmra.mxu1 %vm40_vm2, %v145_v28 }
 0x2be   :  { %899 = vmatpush3.bf16.msra.mxu1 %v1039_v1  ;;  %902 = vmatprep.mubr.msk.bf16.mxu1 %vm1013_vm1, %v1012_v0 }
 0x2bf   :  { %900 = vmatprep.subr.bf16.mxu1 %v1012_v0 }
 0x2c2   :  { %901 = vmatpush3.bf16.msra.mxu1 %v1051_v3 }
 0x2c3   :  { %914 = vmatprep.subr.bf16.mxu1 %v1012_v0 }
 0x37d   :  { %v183_v31 = vpop.f32.mrf.mxu1 }
 0x37e   :  { %v189_v32 = vadd.f32 %v183_v31, %v143_v30 }
 0x37f   :  { %v888_v33 = vpop.f32.mrf.mxu1 }
 0x380   :  { %956 = vtanh.f32 %v189_v32  ;;  %v824_v37 = vmul.f32 -1.442695, %v189_v32 }
 0x381   :  { %v186_v34 = vpop.f32.mrf.mxu1 }
 0x382   :  { %958 = vpow2.f32 %v824_v37 }
 0x383   :  { %v889_v35 = vpop.f32.mrf.mxu1 }
 0x384   :  { %v834_v35 = vld [vmem:[%s1227_s0 + $0x4] sm:$0x1] }
 0x38d   :  { %v957_v36 = vpop.eup %956 }
 0x38e   :  { %199 = vrot.lane.b32.xlu1 %v957_v36, %s1015_s14  ;;  %v425_v36 = vunpack.c.l.bf16 %v834_v35 }
 0x38f   :  { %v959_v38 = vpop.eup %958 }
 0x390   :  { %v193_v39 = vadd.f32 1.0, %v959_v38 }
 0x392   :  { %960 = vrcp.f32 %v193_v39 }
 0x39f   :  { %v961_v40 = vpop.eup %960 }
 0x3a0   :  { %v197_v43 = vmul.f32 %v961_v40, %v113_v23 }
 0x400   :  { %v200_v41 = vpop.permute.xlu1 %199 }
 0x401   :  { %v202_v42 = vmul.f32 %v961_v40, %v200_v41 }
 0x403   :  { %204 = vrot.lane.b32.xlu0 %v202_v42, %s1015_s14 }
 0x475   :  { %v205_v44 = vpop.permute.xlu0 %204 }
 0x476   :  { %v207_v45 = vadd.f32 %v205_v44, %v197_v43 }
 0x478   :  { %962 = vtanh.f32 %v207_v45 }
 0x485   :  { %v963_v46 = vpop.eup %962 }
 0x486   :  { %210 = vrot.lane.b32.xlu1 %v963_v46, %s1015_s14 }
 0x4f8   :  { %v211_v47 = vpop.permute.xlu1 %210 }
 0x4f9   :  { %v213_v48 = vmul.f32 %v961_v40, %v211_v47 }
 0x4fb   :  { %v1093_v49 = vpack.c.bf16 %v213_v48, %v213_v48 }
 0x4fd   :  { %238 = vrot.lane.b32.xlu0 %v1093_v49, %s1016_s15 }
 0x56f   :  { %v239_v50 = vpop.permute.xlu0 %238 }
 0x570   :  { %895 = vmatmul.mubr.msk.bf16.vlgmr.msra.gmra.mxu0 %vm40_vm2, %v239_v50 }
 0x571   :  { %907 = vmatpush3.bf16.msra.mxu0 %v1039_v1  ;;  %910 = vmatprep.mubr.msk.bf16.mxu0 %vm1013_vm1, %v1012_v0 }
 0x572   :  { %908 = vmatprep.subr.bf16.mxu0 %v1012_v0 }
 0x575   :  { %909 = vmatpush3.bf16.msra.mxu0 %v1051_v3 }
 0x576   :  { %922 = vmatprep.subr.bf16.mxu0 %v1012_v0 }
 0x630   :  { %v277_v53 = vpop.f32.mrf.mxu0 }
 0x631   :  { %v283_v54 = vadd.f32 %v277_v53, %v237_v52 }
 0x632   :  { %v896_v55 = vpop.f32.mrf.mxu0 }
 0x633   :  { %964 = vtanh.f32 %v283_v54  ;;  %v828_v59 = vmul.f32 -1.442695, %v283_v54 }
 0x634   :  { %v280_v56 = vpop.f32.mrf.mxu0 }
 0x635   :  { %966 = vpow2.f32 %v828_v59 }
 0x636   :  { %v897_v57 = vpop.f32.mrf.mxu0 }
 0x640   :  { %v965_v58 = vpop.eup %964 }
 0x641   :  { %293 = vrot.lane.b32.xlu1 %v965_v58, %s1015_s14  ;;  %v838_v58 = vld [vmem:[%s1227_s0 + $0x5] sm:$0x1] }
 0x642   :  { %v967_v60 = vpop.eup %966  ;;  %v519_v59 = vunpack.c.l.bf16 %v838_v58 }
 0x643   :  { %v287_v61 = vadd.f32 1.0, %v967_v60 }
 0x645   :  { %968 = vrcp.f32 %v287_v61 }
 0x652   :  { %v969_v62 = vpop.eup %968 }
 0x653   :  { %v291_v4 = vmul.f32 %v969_v62, %v207_v45 }
 0x6b3   :  { %v294_v63 = vpop.permute.xlu1 %293 }
 0x6b4   :  { %v296_v2 = vmul.f32 %v969_v62, %v294_v63 }
 0x6b6   :  { %298 = vrot.lane.b32.xlu0 %v296_v2, %s1015_s14 }
 0x728   :  { %v299_v5 = vpop.permute.xlu0 %298 }
 0x729   :  { %v301_v6 = vadd.f32 %v299_v5, %v291_v4 }
 0x72b   :  { %970 = vtanh.f32 %v301_v6 }
 0x738   :  { %v971_v7 = vpop.eup %970 }
 0x739   :  { %304 = vrot.lane.b32.xlu1 %v971_v7, %s1015_s14 }
 0x7ab   :  { %v305_v8 = vpop.permute.xlu1 %304 }
 0x7ac   :  { %v307_v9 = vmul.f32 %v969_v62, %v305_v8 }
 0x7ae   :  { %v1110_v10 = vpack.c.bf16 %v307_v9, %v307_v9 }
 0x7b0   :  { %332 = vrot.lane.b32.xlu0 %v1110_v10, %s1016_s15 }
 0x822   :  { %v333_v11 = vpop.permute.xlu0 %332 }
 0x823   :  { %903 = vmatmul.mubr.msk.bf16.vlgmr.msra.gmra.mxu1 %vm40_vm2, %v333_v11 }
 0x824   :  { %915 = vmatpush3.bf16.msra.mxu1 %v1039_v1  ;;  %918 = vmatprep.mubr.msk.bf16.mxu1 %vm1013_vm1, %v1012_v0 }
 0x825   :  { %916 = vmatprep.subr.bf16.mxu1 %v1012_v0 }
 0x828   :  { %917 = vmatpush3.bf16.msra.mxu1 %v1051_v3 }
 0x829   :  { %930 = vmatprep.subr.bf16.mxu1 %v1012_v0 }
 0x8e3   :  { %v371_v14 = vpop.f32.mrf.mxu1 }
 0x8e4   :  { %v377_v15 = vadd.f32 %v371_v14, %v331_v13 }
 0x8e5   :  { %v904_v16 = vpop.f32.mrf.mxu1 }
 0x8e6   :  { %972 = vtanh.f32 %v377_v15  ;;  %v832_v20 = vmul.f32 -1.442695, %v377_v15 }
 0x8e7   :  { %v374_v17 = vpop.f32.mrf.mxu1 }
 0x8e8   :  { %974 = vpow2.f32 %v832_v20  ;;  %v842_v17 = vld [vmem:[%s1227_s0 + $0x6] sm:$0x1] }
 0x8e9   :  { %v905_v18 = vpop.f32.mrf.mxu1 }
 0x8ea   :  { %v613_v18 = vunpack.c.l.bf16 %v842_v17 }
 0x8f3   :  { %v973_v19 = vpop.eup %972 }
 0x8f4   :  { %387 = vrot.lane.b32.xlu1 %v973_v19, %s1015_s14 }
 0x8f5   :  { %v975_v21 = vpop.eup %974 }
 0x8f6   :  { %v381_v22 = vadd.f32 1.0, %v975_v21 }
 0x8f8   :  { %976 = vrcp.f32 %v381_v22 }
 0x905   :  { %v977_v23 = vpop.eup %976 }
 0x906   :  { %v385_v26 = vmul.f32 %v977_v23, %v301_v6 }
 0x966   :  { %v388_v24 = vpop.permute.xlu1 %387 }
 0x967   :  { %v390_v25 = vmul.f32 %v977_v23, %v388_v24 }
 0x969   :  { %392 = vrot.lane.b32.xlu0 %v390_v25, %s1015_s14 }
 0x9db   :  { %v393_v28 = vpop.permute.xlu0 %392 }
 0x9dc   :  { %v395_v29 = vadd.f32 %v393_v28, %v385_v26 }
 0x9de   :  { %978 = vtanh.f32 %v395_v29 }
 0x9eb   :  { %v979_v30 = vpop.eup %978 }
 0x9ec   :  { %398 = vrot.lane.b32.xlu1 %v979_v30, %s1015_s14 }
 0xa5e   :  { %v399_v31 = vpop.permute.xlu1 %398 }
 0xa5f   :  { %v401_v32 = vmul.f32 %v977_v23, %v399_v31 }
 0xa61   :  { %v1127_v33 = vpack.c.bf16 %v401_v32, %v401_v32 }
 0xa63   :  { %426 = vrot.lane.b32.xlu0 %v1127_v33, %s1016_s15 }
 0xad5   :  { %v427_v34 = vpop.permute.xlu0 %426 }
 0xad6   :  { %911 = vmatmul.mubr.msk.bf16.vlgmr.msra.gmra.mxu0 %vm40_vm2, %v427_v34 }
 0xad7   :  { %923 = vmatpush3.bf16.msra.mxu0 %v1039_v1  ;;  %926 = vmatprep.mubr.msk.bf16.mxu0 %vm1013_vm1, %v1012_v0 }
 0xad8   :  { %924 = vmatprep.subr.bf16.mxu0 %v1012_v0 }
 0xadb   :  { %925 = vmatpush3.bf16.msra.mxu0 %v1051_v3 }
 0xb96   :  { %v465_v37 = vpop.f32.mrf.mxu0 }
 0xb97   :  { %v471_v38 = vadd.f32 %v465_v37, %v425_v36 }
 0xb98   :  { %v912_v39 = vpop.f32.mrf.mxu0 }
 0xb99   :  { %980 = vtanh.f32 %v471_v38  ;;  %v836_v43 = vmul.f32 -1.442695, %v471_v38 }
 0xb9a   :  { %v468_v40 = vpop.f32.mrf.mxu0 }
 0xb9b   :  { %982 = vpow2.f32 %v836_v43 }
 0xb9c   :  { %v913_v41 = vpop.f32.mrf.mxu0 }
 0xb9d   :  { %v846_v41 = vld [vmem:[%s1227_s0 + $0x7] sm:$0x1] }
 0xba6   :  { %v981_v42 = vpop.eup %980 }
 0xba7   :  { %481 = vrot.lane.b32.xlu1 %v981_v42, %s1015_s14  ;;  %v707_v42 = vunpack.c.l.bf16 %v846_v41 }
 0xba8   :  { %v983_v44 = vpop.eup %982 }
 0xba9   :  { %v475_v45 = vadd.f32 1.0, %v983_v44 }
 0xbab   :  { %984 = vrcp.f32 %v475_v45 }
 0xbb8   :  { %v985_v46 = vpop.eup %984 }
 0xbb9   :  { %v479_v50 = vmul.f32 %v985_v46, %v395_v29 }
 0xc19   :  { %v482_v47 = vpop.permute.xlu1 %481 }
 0xc1a   :  { %v484_v48 = vmul.f32 %v985_v46, %v482_v47 }
 0xc1c   :  { %486 = vrot.lane.b32.xlu0 %v484_v48, %s1015_s14 }
 0xc8e   :  { %v487_v51 = vpop.permute.xlu0 %486 }
 0xc8f   :  { %v489_v52 = vadd.f32 %v487_v51, %v479_v50 }
 0xc91   :  { %986 = vtanh.f32 %v489_v52 }
 0xc9e   :  { %v987_v53 = vpop.eup %986 }
 0xc9f   :  { %492 = vrot.lane.b32.xlu1 %v987_v53, %s1015_s14  ;;  %v1017_v53 = vmov 1966171168  }
 0xd11   :  { %v493_v54 = vpop.permute.xlu1 %492 }
 0xd12   :  { %v495_v55 = vmul.f32 %v985_v46, %v493_v54  ;;  %v123_v54 = vunpack.c.l.s4 %v1017_v53 }
 0xd14   :  { %v1143_v56 = vpack.c.bf16 %v495_v55, %v495_v55  ;;  %v125_v55 = vlaneseq }
 0xd16   :  { %520 = vrot.lane.b32.xlu0 %v1143_v56, %s1016_s15  ;;  %v126_v58 = vshrl.u32 %v125_v55, 7 }
 0xd88   :  { %v521_v57 = vpop.permute.xlu0 %520 }
 0xd89   :  { %919 = vmatmul.mubr.msk.bf16.vlgmr.msra.gmra.mxu1 %vm40_vm2, %v521_v57  ;;  %v124_v57 = vunpack.c.0.s8 %v123_v54 }
 0xd8a   :  { %931 = vmatpush3.bf16.msra.mxu1 %v1039_v1  ;;  %934 = vmatprep.mubr.msk.bf16.mxu1 %vm1013_vm1, %v1012_v0 }
 0xd8b   :  { %932 = vmatprep.subr.bf16.mxu1 %v1012_v0 }
 0xd8e   :  { %933 = vmatpush3.bf16.msra.mxu1 %v1051_v3 }
 0xe49   :  { %v559_v60 = vpop.f32.mrf.mxu1 }
 0xe4a   :  { %v565_v61 = vadd.f32 %v559_v60, %v519_v59  ;;  %v127_v59 = vsub.s32 %v124_v57, %v126_v58 }
 0xe4b   :  { %v920_v62 = vpop.f32.mrf.mxu1 }
 0xe4c   :  { %988 = vtanh.f32 %v565_v61  ;;  %v840_v1 = vmul.f32 -1.442695, %v565_v61  ;;  %v128_v62 = vrot.slane %v1076_v27, %v127_v59  ;;  %v1018_v27 = vmov 1983009808  }
 0xe4d   :  { %v562_v63 = vpop.f32.mrf.mxu1  ;;  %v222_v17 = vrot.slane %v1093_v49, %v127_v59 }
 0xe4e   :  { %990 = vpow2.f32 %v840_v1  ;;  %v504_v1 = vrot.slane %v1143_v56, %v127_v59 }
 0xe4f   :  { %v921_v2 = vpop.f32.mrf.mxu1 }
 0xe50   :  { %v316_v2 = vrot.slane %v1110_v10, %v127_v59 }
 0xe59   :  { %v989_v4 = vpop.eup %988 }
 0xe5a   :  { %575 = vrot.lane.b32.xlu1 %v989_v4, %s1015_s14  ;;  %v135_v4 = vrot.slane %v128_v62, %v127_v59 }
 0xe5b   :  { %v991_v5 = vpop.eup %990 }
 0xe5c   :  { %v569_v0 = vadd.f32 1.0, %v991_v5  ;;  %v323_v5 = vrot.slane %v316_v2, %v127_v59 }
 0xe5e   :  { %992 = vrcp.f32 %v569_v0 }
 0xe6b   :  { %v993_v3 = vpop.eup %992 }
 0xe6c   :  { %v573_v8 = vmul.f32 %v993_v3, %v489_v52 }
 0xecc   :  { %v576_v6 = vpop.permute.xlu1 %575 }
 0xecd   :  { %v578_v7 = vmul.f32 %v993_v3, %v576_v6 }
 0xecf   :  { %580 = vrot.lane.b32.xlu0 %v578_v7, %s1015_s14  ;;  %v802_v7 = vunpack.c.l.s4 %v1018_v27 }
 0xf41   :  { %v581_v9 = vpop.permute.xlu0 %580 }
 0xf42   :  { %v583_v11 = vadd.f32 %v581_v9, %v573_v8  ;;  %v803_v8 = vunpack.c.0.s8 %v802_v7 }
 0xf44   :  { %994 = vtanh.f32 %v583_v11  ;;  %v806_v9 = vsub.s32 %v803_v8, %v126_v58 }
 0xf51   :  { %v995_v12 = vpop.eup %994 }
 0xf52   :  { %586 = vrot.lane.b32.xlu1 %v995_v12, %s1015_s14 }
 0xfc4   :  { %v587_v13 = vpop.permute.xlu1 %586 }
 0xfc5   :  { %v589_v14 = vmul.f32 %v993_v3, %v587_v13  ;;  %v511_v3 = vrot.slane %v504_v1, %v127_v59 }
 0xfc7   :  { %v1159_v15 = vpack.c.bf16 %v589_v14, %v589_v14 }
 0xfc9   :  { %614 = vrot.lane.b32.xlu0 %v1159_v15, %s1016_s15 }
0x103b   :  { %v615_v16 = vpop.permute.xlu0 %614 }
0x103c   :  { %927 = vmatmul.mubr.msk.bf16.vlgmr.msra.gmra.mxu0 %vm40_vm2, %v615_v16 }
0x10fc   :  { %v653_v19 = vpop.f32.mrf.mxu0 }
0x10fd   :  { %v659_v20 = vadd.f32 %v653_v19, %v613_v18 }
0x10fe   :  { %v928_v21 = vpop.f32.mrf.mxu0 }
0x10ff   :  { %996 = vtanh.f32 %v659_v20  ;;  %v844_v25 = vmul.f32 -1.442695, %v659_v20  ;;  %v410_v20 = vrot.slane %v1127_v33, %v127_v59  ;;  %v229_v21 = vrot.slane %v222_v17, %v127_v59 }
0x1100   :  { %v656_v22 = vpop.f32.mrf.mxu0 }
0x1101   :  { %998 = vpow2.f32 %v844_v25  ;;  %v598_v22 = vrot.slane %v1159_v15, %v127_v59 }
0x1102   :  { %v929_v23 = vpop.f32.mrf.mxu0 }
0x1103   :  { %v417_v23 = vrot.slane %v410_v20, %v127_v59  ;;  %v605_v49 = vrot.slane %v598_v22, %v127_v59 }
0x110c   :  { %v997_v24 = vpop.eup %996 }
0x110d   :  { %669 = vrot.lane.b32.xlu1 %v997_v24, %s1015_s14 }
0x110e   :  { %v999_v26 = vpop.eup %998 }
0x110f   :  { %v663_v28 = vadd.f32 1.0, %v999_v26 }
0x1111   :  { %1000 = vrcp.f32 %v663_v28 }
0x111e   :  { %v1001_v29 = vpop.eup %1000 }
0x111f   :  { %v667_v32 = vmul.f32 %v1001_v29, %v583_v11 }
0x117f   :  { %v670_v30 = vpop.permute.xlu1 %669 }
0x1180   :  { %v672_v31 = vmul.f32 %v1001_v29, %v670_v30 }
0x1182   :  { %674 = vrot.lane.b32.xlu0 %v672_v31, %s1015_s14 }
0x11f4   :  { %v675_v34 = vpop.permute.xlu0 %674 }
0x11f5   :  { %v677_v35 = vadd.f32 %v675_v34, %v667_v32 }
0x11f7   :  { %1002 = vtanh.f32 %v677_v35 }
0x1204   :  { %v1003_v36 = vpop.eup %1002 }
0x1205   :  { %680 = vrot.lane.b32.xlu1 %v1003_v36, %s1015_s14 }
0x1277   :  { %v681_v37 = vpop.permute.xlu1 %680 }
0x1278   :  { %v683_v38 = vmul.f32 %v1001_v29, %v681_v37 }
0x127a   :  { %v684_v39 = vpack.c.bf16 %v683_v38, %v683_v38 }
0x127c   :  { %708 = vrot.lane.b32.xlu0 %v684_v39, %s1016_s15  ;;  %v692_v0 = vrot.slane %v684_v39, %v127_v59 }
0x127e   :  { %v699_v6 = vrot.slane %v692_v0, %v127_v59 }
0x12ee   :  { %v709_v40 = vpop.permute.xlu0 %708 }
0x12ef   :  { %935 = vmatmul.mubr.msk.bf16.vlgmr.msra.gmra.mxu1 %vm40_vm2, %v709_v40 }
0x13af   :  { %v747_v43 = vpop.f32.mrf.mxu1 }
0x13b0   :  { %v753_v44 = vadd.f32 %v747_v43, %v707_v42 }
0x13b1   :  { %v936_v45 = vpop.f32.mrf.mxu1 }
0x13b2   :  { %1004 = vtanh.f32 %v753_v44  ;;  %v848_v50 = vmul.f32 -1.442695, %v753_v44 }
0x13b3   :  { %v750_v46 = vpop.f32.mrf.mxu1 }
0x13b4   :  { %1006 = vpow2.f32 %v848_v50 }
0x13b5   :  { %v937_v47 = vpop.f32.mrf.mxu1 }
0x13bf   :  { %v1005_v48 = vpop.eup %1004 }
0x13c0   :  { %763 = vrot.lane.b32.xlu1 %v1005_v48, %s1015_s14 }
0x13c1   :  { %v1007_v51 = vpop.eup %1006 }
0x13c2   :  { %v757_v52 = vadd.f32 1.0, %v1007_v51 }
0x13c4   :  { %1008 = vrcp.f32 %v757_v52 }
0x13d1   :  { %v1009_v60 = vpop.eup %1008 }
0x13d2   :  { %v761_v10 = vmul.f32 %v1009_v60, %v677_v35 }
0x1432   :  { %v764_v61 = vpop.permute.xlu1 %763 }
0x1433   :  { %v766_v63 = vmul.f32 %v1009_v60, %v764_v61 }
0x1435   :  { %768 = vrot.lane.b32.xlu0 %v766_v63, %s1015_s14 }
0x1439   :  { %136 = vrot.lane.b32.xlu0 %v135_v4, %s1016_s15 }
0x143d   :  { %324 = vrot.lane.b32.xlu0 %v323_v5, %s1016_s15 }
0x1441   :  { %512 = vrot.lane.b32.xlu0 %v511_v3, %s1016_s15 }
0x1445   :  { %700 = vrot.lane.b32.xlu0 %v699_v6, %s1016_s15 }
0x14a7   :  { %v769_v11 = vpop.permute.xlu0 %768 }
0x14a8   :  { %v771_v12 = vadd.f32 %v769_v11, %v761_v10 }
0x14aa   :  { %1010 = vtanh.f32 %v771_v12  ;;  %v807_v13 = vrot.slane %v771_v12, %v806_v9 }
0x14ab   :  { %v137_v56 = vpop.permute.xlu0 %136 }
0x14ac   :  { %140 = vst.msk [vmem:[%s1228_s2] sm:$0x1] %vm16_vm0, %v137_v56  ;;  %808 = vrot.lane.b32.xlu0 %v807_v13, %s1019_s3 }
0x14af   :  { %v325_v14 = vpop.permute.xlu0 %324 }
0x14b0   :  { %829 = vst.msk [vmem:[%s1228_s2 + $0x2] sm:$0x1] %vm16_vm0, %v325_v14 }
0x14b3   :  { %v513_v16 = vpop.permute.xlu0 %512 }
0x14b4   :  { %837 = vst.msk [vmem:[%s1228_s2 + $0x4] sm:$0x1] %vm16_vm0, %v513_v16 }
0x14b7   :  { %v1011_v18 = vpop.eup %1010  ;;  %v701_v19 = vpop.permute.xlu0 %700 }
0x14b8   :  { %845 = vst.msk [vmem:[%s1228_s2 + $0x6] sm:$0x1] %vm16_vm0, %v701_v19  ;;  %774 = vrot.lane.b32.xlu1 %v1011_v18, %s1015_s14 }
0x14bc   :  { %230 = vrot.lane.b32.xlu1 %v229_v21, %s1016_s15 }
0x14c0   :  { %418 = vrot.lane.b32.xlu1 %v417_v23, %s1016_s15 }
0x14c4   :  { %606 = vrot.lane.b32.xlu1 %v605_v49, %s1016_s15 }
0x151e   :  { %v809_v24 = vpop.permute.xlu0 %808 }
0x151f   :  { %812 = vst.msk [vmem:[#allocation3] sm:$0x3] %vm18_vm3, %v809_v24 }
0x152a   :  { %v775_v25 = vpop.permute.xlu1 %774 }
0x152b   :  { %v777_v26 = vmul.f32 %v1009_v60, %v775_v25 }
0x152d   :  { %v778_v28 = vpack.c.bf16 %v777_v26, %v777_v26 }
0x152e   :  { %v231_v29 = vpop.permute.xlu1 %230 }
0x152f   :  { %v786_v30 = vrot.slane %v778_v28, %v127_v59  ;;  %825 = vst.msk [vmem:[%s1228_s2 + $0x1] sm:$0x1] %vm16_vm0, %v231_v29 }
0x1531   :  { %v793_v33 = vrot.slane %v786_v30, %v127_v59 }
0x1532   :  { %v419_v15 = vpop.permute.xlu1 %418 }
0x1533   :  { %833 = vst.msk [vmem:[%s1228_s2 + $0x3] sm:$0x1] %vm16_vm0, %v419_v15  ;;  %794 = vrot.lane.b32.xlu1 %v793_v33, %s1016_s15 }
0x1536   :  { %v607_v31 = vpop.permute.xlu1 %606 }
0x1537   :  { %841 = vst.msk [vmem:[%s1228_s2 + $0x5] sm:$0x1] %vm16_vm0, %v607_v31 }
0x15a5   :  { %v795_v32 = vpop.permute.xlu1 %794 }
0x15a6   :  { %849 = vst.msk [vmem:[%s1228_s2 + $0x7] sm:$0x1] %vm16_vm0, %v795_v32  ;;  %799 = vst.msk [vmem:[#allocation2] sm:$0x1] %vm16_vm0, %v795_v32 }

// kernel: lstm_model_forward.7
= control target key start
LH: loop header
LB: loop body
LE: loop exit
PB: predicated region body
PF: predicated region fallthrough
CT: control target
= control target key end

     0   :  { %vm22_vm0 = vcmask 253952   ;;  %v1348_v0 = vmov 0.0   ;;  %vm1349_vm1 = vmmov 0   ;;  %v1350_v2 = vmov 0   ;;  %s1351_s20 = smov 32   ;;  %s1352_s25 = smov 64   ;;  %s1613_s1 = inlined_call_operand.vmem [shape: bf16[32,128], index: 1, kind: input, shape index: {}]   ;;  %s1614_s0 = inlined_call_operand.vmem [shape: bf16[8,2,128], index: 0, kind: input, shape index: {}]   ;;  %s1615_s2 = inlined_call_operand.vmem [shape: bf16[32,128], index: 2, kind: input, shape index: {}]   ;;  %s1616_s3 = inlined_call_operand.vmem [shape: f32[1,128], index: 3, kind: input, shape index: {}]   ;;  %s1617_s4 = inlined_call_operand.vmem [shape: f32[8,2,128], index: 4, kind: output, shape index: {}]  }
   0x1   :  { %1144 = vmatprep.subr.bf16.mxu0 %v1348_v0  ;;  %v1385_v1 = vld [vmem:[%s1613_s1 + $0x8] sm:$0xff]   ;;  %1148 = vmatprep.mubr.msk.bf16.mxu0 %vm1349_vm1, %v1348_v0  ;;  %23 = vst.msk [vmem:[#allocation2] sm:$0x1] %vm22_vm0, %v1350_v2  ;;  %v1397_v3 = vld [vmem:[%s1613_s1] sm:$0xff]   ;;  %vm51_vm2 = vcmask 261120   ;;  %vm24_vm3 = vcmask 254976  }
   0x2   :  { %1152 = vmatprep.subr.bf16.mxu1 %v1348_v0  ;;  %1156 = vmatprep.mubr.msk.bf16.mxu1 %vm1349_vm1, %v1348_v0  ;;  %25 = vst.msk [vmem:[#allocation3] sm:$0x3] %vm24_vm3, %v1348_v0  ;;  %v37_v5 = vld [vmem:[%s1614_s0] sm:$0x1]  ;;  %v1420_v24 = vld [vmem:[%s1615_s2 + $0x8] sm:$0xff]  }
   0x3   :  { %1145 = vmatpush3.bf16.msra.mxu0 %v1385_v1  ;;  %v38_v6 = vunpack.c.l.bf16 %v37_v5  ;;  %1153 = vmatpush3.bf16.msra.mxu1 %v1420_v24  ;;  %v1426_v25 = vld [vmem:[%s1615_s2] sm:$0xff]  }
   0x4   :  { %1146 = vmatprep.subr.bf16.mxu0 %v1348_v0  ;;  %1154 = vmatprep.subr.bf16.mxu1 %v1348_v0  ;;  %v1061_v31 = vld [vmem:[%s1614_s0 + $0x1] sm:$0x1]  ;;  %v1453_v33 = vld [vmem:[%s1616_s3] ss:$0 sm:$0xff]  ;;  %v1066_v59 = vld [vmem:[%s1614_s0 + $0x2] sm:$0x1] }
   0x5   :  { %v199_v32 = vunpack.c.l.bf16 %v1061_v31  ;;  %v316_v60 = vunpack.c.l.bf16 %v1066_v59 }
   0x7   :  { %1147 = vmatpush3.bf16.msra.mxu0 %v1397_v3  ;;  %1155 = vmatpush3.bf16.msra.mxu1 %v1426_v25 }
   0x8   :  { %v35_v4 = vld [vmem:[#allocation2] sm:$0x1]  ;;  %1160 = vmatprep.subr.bf16.mxu0 %v1348_v0  ;;  %1168 = vmatprep.subr.bf16.mxu1 %v1348_v0 }
   0x9   :  { %v1056_v13 = vld.sshfl [vmem:[#allocation3] sm:$0x3 pattern:$0x76325410] }
   0xa   :  { %1149 = vmatmul.mubr.msk.bf16.vlgmr.msra.gmra.mxu0 %vm51_vm2, %v35_v4 }
   0xb   :  { %1161 = vmatpush3.bf16.msra.mxu0 %v1385_v1  ;;  %1164 = vmatprep.mubr.msk.bf16.mxu0 %vm1349_vm1, %v1348_v0 }
   0xc   :  { %1162 = vmatprep.subr.bf16.mxu0 %v1348_v0 }
   0xf   :  { %1163 = vmatpush3.bf16.msra.mxu0 %v1397_v3 }
  0x10   :  { %1176 = vmatprep.subr.bf16.mxu0 %v1348_v0 }
  0xca   :  { %v89_v7 = vpop.f32.mrf.mxu0 }
  0xcb   :  { %v95_v8 = vadd.f32 %v89_v7, %v38_v6 }
  0xcc   :  { %v1150_v9 = vpop.f32.mrf.mxu0 }
  0xcd   :  { %1284 = vtanh.f32 %v95_v8  ;;  %v1055_v14 = vmul.f32 -1.442695, %v95_v8 }
  0xce   :  { %v92_v10 = vpop.f32.mrf.mxu0 }
  0xcf   :  { %1286 = vpow2.f32 %v1055_v14 }
  0xd0   :  { %v1151_v11 = vpop.f32.mrf.mxu0 }
  0xda   :  { %v1285_v12 = vpop.eup %1284 }
  0xdb   :  { %116 = vrot.lane.b32.xlu0 %v1285_v12, %s1351_s20 }
  0xdc   :  { %v1287_v15 = vpop.eup %1286 }
  0xdd   :  { %v99_v16 = vadd.f32 1.0, %v1287_v15 }
  0xdf   :  { %111 = vrot.lane.b32.xlu0 %v1056_v13, %s1351_s20  ;;  %1288 = vrcp.f32 %v99_v16 }
  0xec   :  { %v1289_v17 = vpop.eup %1288 }
 0x14d   :  { %v117_v18 = vpop.permute.xlu0 %116 }
 0x14e   :  { %v119_v19 = vmul.f32 %v1289_v17, %v117_v18 }
 0x150   :  { %121 = vrot.lane.b32.xlu1 %v119_v19, %s1351_s20 }
 0x151   :  { %v112_v20 = vpop.permute.xlu0 %111 }
 0x152   :  { %v114_v21 = vmul.f32 %v1289_v17, %v112_v20 }
 0x1c2   :  { %v122_v22 = vpop.permute.xlu1 %121 }
 0x1c3   :  { %v124_v23 = vadd.f32 %v122_v22, %v114_v21 }
 0x1c5   :  { %1290 = vtanh.f32 %v124_v23 }
 0x1d2   :  { %v1291_v26 = vpop.eup %1290 }
 0x1d3   :  { %127 = vrot.lane.b32.xlu1 %v1291_v26, %s1351_s20 }
 0x245   :  { %v128_v27 = vpop.permute.xlu1 %127 }
 0x246   :  { %v130_v28 = vmul.f32 %v1289_v17, %v128_v27  ;;  %v1071_v27 = vld [vmem:[%s1614_s0 + $0x3] sm:$0x1] }
 0x248   :  { %v131_v29 = vpack.c.bf16 %v130_v28, %v130_v28  ;;  %v433_v28 = vunpack.c.l.bf16 %v1071_v27 }
 0x24a   :  { %139 = vrot.lane.b32.xlu0 %v131_v29, %s1352_s25 }
 0x2bc   :  { %v140_v30 = vpop.permute.xlu0 %139 }
 0x2bd   :  { %1157 = vmatmul.mubr.msk.bf16.vlgmr.msra.gmra.mxu1 %vm51_vm2, %v140_v30  ;;  %1165 = vmatmul.mubr.msk.bf16.vlgmr.msra.gmra.mxu0 %vm51_vm2, %v140_v30 }
 0x2be   :  { %1177 = vmatpush3.bf16.msra.mxu0 %v1385_v1  ;;  %1169 = vmatpush3.bf16.msra.mxu1 %v1420_v24 }
 0x2bf   :  { %1178 = vmatprep.subr.bf16.mxu0 %v1348_v0  ;;  %1170 = vmatprep.subr.bf16.mxu1 %v1348_v0 }
 0x2c0   :  { %1180 = vmatprep.mubr.msk.bf16.mxu0 %vm1349_vm1, %v1348_v0  ;;  %1172 = vmatprep.mubr.msk.bf16.mxu1 %vm1349_vm1, %v1348_v0 }
 0x2c2   :  { %1179 = vmatpush3.bf16.msra.mxu0 %v1397_v3  ;;  %1171 = vmatpush3.bf16.msra.mxu1 %v1426_v25 }
 0x2c3   :  { %1192 = vmatprep.subr.bf16.mxu0 %v1348_v0  ;;  %1184 = vmatprep.subr.bf16.mxu1 %v1348_v0 }
 0x37d   :  { %v190_v34 = vpop.f32.mrf.mxu1  ;;  %v234_v35 = vpop.f32.mrf.mxu0 }
 0x37e   :  { %v191_v36 = vadd.f32 %v1453_v33, %v190_v34  ;;  %v240_v37 = vadd.f32 %v234_v35, %v199_v32 }
 0x37f   :  { %v1158_v38 = vpop.f32.mrf.mxu1  ;;  %v1166_v39 = vpop.f32.mrf.mxu0 }
 0x380   :  { %196 = vst [vmem:[%s1617_s4] sm:$0x3] %v191_v36  ;;  %1292 = vtanh.f32 %v240_v37  ;;  %v1063_v45 = vmul.f32 -1.442695, %v240_v37 }
 0x381   :  { %v193_v40 = vpop.f32.mrf.mxu1  ;;  %v237_v41 = vpop.f32.mrf.mxu0 }
 0x382   :  { %1294 = vpow2.f32 %v1063_v45 }
 0x383   :  { %v1159_v42 = vpop.f32.mrf.mxu1  ;;  %v1167_v43 = vpop.f32.mrf.mxu0 }
 0x38d   :  { %v1293_v44 = vpop.eup %1292 }
 0x38e   :  { %250 = vrot.lane.b32.xlu1 %v1293_v44, %s1351_s20 }
 0x38f   :  { %v1295_v46 = vpop.eup %1294 }
 0x390   :  { %v244_v47 = vadd.f32 1.0, %v1295_v46 }
 0x392   :  { %1296 = vrcp.f32 %v244_v47 }
 0x39f   :  { %v1297_v48 = vpop.eup %1296 }
 0x3a0   :  { %v248_v51 = vmul.f32 %v1297_v48, %v124_v23 }
 0x400   :  { %v251_v49 = vpop.permute.xlu1 %250 }
 0x401   :  { %v253_v50 = vmul.f32 %v1297_v48, %v251_v49 }
 0x403   :  { %255 = vrot.lane.b32.xlu0 %v253_v50, %s1351_s20 }
 0x475   :  { %v256_v52 = vpop.permute.xlu0 %255 }
 0x476   :  { %v258_v53 = vadd.f32 %v256_v52, %v248_v51 }
 0x478   :  { %1298 = vtanh.f32 %v258_v53 }
 0x485   :  { %v1299_v54 = vpop.eup %1298 }
 0x486   :  { %261 = vrot.lane.b32.xlu1 %v1299_v54, %s1351_s20 }
 0x4f8   :  { %v262_v55 = vpop.permute.xlu1 %261 }
 0x4f9   :  { %v264_v56 = vmul.f32 %v1297_v48, %v262_v55  ;;  %v1076_v55 = vld [vmem:[%s1614_s0 + $0x4] sm:$0x1] }
 0x4fb   :  { %v265_v57 = vpack.c.bf16 %v264_v56, %v264_v56  ;;  %v550_v56 = vunpack.c.l.bf16 %v1076_v55 }
 0x4fd   :  { %267 = vrot.lane.b32.xlu0 %v265_v57, %s1352_s25 }
 0x56f   :  { %v268_v58 = vpop.permute.xlu0 %267 }
 0x570   :  { %1173 = vmatmul.mubr.msk.bf16.vlgmr.msra.gmra.mxu1 %vm51_vm2, %v268_v58  ;;  %1181 = vmatmul.mubr.msk.bf16.vlgmr.msra.gmra.mxu0 %vm51_vm2, %v268_v58 }
 0x571   :  { %1193 = vmatpush3.bf16.msra.mxu0 %v1385_v1  ;;  %1185 = vmatpush3.bf16.msra.mxu1 %v1420_v24 }
 0x572   :  { %1194 = vmatprep.subr.bf16.mxu0 %v1348_v0  ;;  %1186 = vmatprep.subr.bf16.mxu1 %v1348_v0 }
 0x573   :  { %1196 = vmatprep.mubr.msk.bf16.mxu0 %vm1349_vm1, %v1348_v0  ;;  %1188 = vmatprep.mubr.msk.bf16.mxu1 %vm1349_vm1, %v1348_v0 }
 0x575   :  { %1195 = vmatpush3.bf16.msra.mxu0 %v1397_v3  ;;  %1187 = vmatpush3.bf16.msra.mxu1 %v1426_v25 }
 0x576   :  { %1208 = vmatprep.subr.bf16.mxu0 %v1348_v0  ;;  %1200 = vmatprep.subr.bf16.mxu1 %v1348_v0 }
 0x630   :  { %v306_v61 = vpop.f32.mrf.mxu1  ;;  %v351_v62 = vpop.f32.mrf.mxu0 }
 0x631   :  { %v307_v63 = vadd.f32 %v1453_v33, %v306_v61  ;;  %v357_v2 = vadd.f32 %v351_v62, %v316_v60 }
 0x632   :  { %v1174_v4 = vpop.f32.mrf.mxu1  ;;  %v1182_v5 = vpop.f32.mrf.mxu0 }
 0x633   :  { %1065 = vst [vmem:[%s1617_s4 + $0x2] sm:$0x3] %v307_v63  ;;  %1300 = vtanh.f32 %v357_v2  ;;  %v1068_v11 = vmul.f32 -1.442695, %v357_v2 }
 0x634   :  { %v309_v6 = vpop.f32.mrf.mxu1  ;;  %v354_v7 = vpop.f32.mrf.mxu0 }
 0x635   :  { %1302 = vpow2.f32 %v1068_v11 }
 0x636   :  { %v1175_v8 = vpop.f32.mrf.mxu1  ;;  %v1183_v9 = vpop.f32.mrf.mxu0 }
 0x640   :  { %v1301_v10 = vpop.eup %1300 }
 0x641   :  { %367 = vrot.lane.b32.xlu1 %v1301_v10, %s1351_s20 }
 0x642   :  { %v1303_v12 = vpop.eup %1302 }
 0x643   :  { %v361_v13 = vadd.f32 1.0, %v1303_v12 }
 0x645   :  { %1304 = vrcp.f32 %v361_v13 }
 0x652   :  { %v1305_v14 = vpop.eup %1304 }
 0x653   :  { %v365_v17 = vmul.f32 %v1305_v14, %v258_v53 }
 0x6b3   :  { %v368_v15 = vpop.permute.xlu1 %367 }
 0x6b4   :  { %v370_v16 = vmul.f32 %v1305_v14, %v368_v15 }
 0x6b6   :  { %372 = vrot.lane.b32.xlu0 %v370_v16, %s1351_s20 }
 0x728   :  { %v373_v18 = vpop.permute.xlu0 %372 }
 0x729   :  { %v375_v19 = vadd.f32 %v373_v18, %v365_v17 }
 0x72b   :  { %1306 = vtanh.f32 %v375_v19 }
 0x738   :  { %v1307_v20 = vpop.eup %1306 }
 0x739   :  { %378 = vrot.lane.b32.xlu1 %v1307_v20, %s1351_s20 }
 0x7ab   :  { %v379_v21 = vpop.permute.xlu1 %378 }
 0x7ac   :  { %v381_v22 = vmul.f32 %v1305_v14, %v379_v21  ;;  %v1081_v21 = vld [vmem:[%s1614_s0 + $0x5] sm:$0x1] }
 0x7ae   :  { %v382_v23 = vpack.c.bf16 %v381_v22, %v381_v22  ;;  %v667_v22 = vunpack.c.l.bf16 %v1081_v21 }
 0x7b0   :  { %384 = vrot.lane.b32.xlu0 %v382_v23, %s1352_s25 }
 0x822   :  { %v385_v26 = vpop.permute.xlu0 %384 }
 0x823   :  { %1189 = vmatmul.mubr.msk.bf16.vlgmr.msra.gmra.mxu1 %vm51_vm2, %v385_v26  ;;  %1197 = vmatmul.mubr.msk.bf16.vlgmr.msra.gmra.mxu0 %vm51_vm2, %v385_v26 }
 0x824   :  { %1209 = vmatpush3.bf16.msra.mxu0 %v1385_v1  ;;  %1201 = vmatpush3.bf16.msra.mxu1 %v1420_v24 }
 0x825   :  { %1210 = vmatprep.subr.bf16.mxu0 %v1348_v0  ;;  %1202 = vmatprep.subr.bf16.mxu1 %v1348_v0 }
 0x826   :  { %1212 = vmatprep.mubr.msk.bf16.mxu0 %vm1349_vm1, %v1348_v0  ;;  %1204 = vmatprep.mubr.msk.bf16.mxu1 %vm1349_vm1, %v1348_v0 }
 0x828   :  { %1211 = vmatpush3.bf16.msra.mxu0 %v1397_v3  ;;  %1203 = vmatpush3.bf16.msra.mxu1 %v1426_v25 }
 0x829   :  { %1224 = vmatprep.subr.bf16.mxu0 %v1348_v0  ;;  %1216 = vmatprep.subr.bf16.mxu1 %v1348_v0 }
 0x8e3   :  { %v423_v29 = vpop.f32.mrf.mxu1  ;;  %v468_v30 = vpop.f32.mrf.mxu0 }
 0x8e4   :  { %v424_v31 = vadd.f32 %v1453_v33, %v423_v29  ;;  %v474_v32 = vadd.f32 %v468_v30, %v433_v28 }
 0x8e5   :  { %v1190_v34 = vpop.f32.mrf.mxu1  ;;  %v1198_v35 = vpop.f32.mrf.mxu0 }
 0x8e6   :  { %1070 = vst [vmem:[%s1617_s4 + $0x4] sm:$0x3] %v424_v31  ;;  %1308 = vtanh.f32 %v474_v32  ;;  %v1073_v41 = vmul.f32 -1.442695, %v474_v32 }
 0x8e7   :  { %v426_v36 = vpop.f32.mrf.mxu1  ;;  %v471_v37 = vpop.f32.mrf.mxu0 }
 0x8e8   :  { %1310 = vpow2.f32 %v1073_v41 }
 0x8e9   :  { %v1191_v38 = vpop.f32.mrf.mxu1  ;;  %v1199_v39 = vpop.f32.mrf.mxu0 }
 0x8f3   :  { %v1309_v40 = vpop.eup %1308 }
 0x8f4   :  { %484 = vrot.lane.b32.xlu1 %v1309_v40, %s1351_s20 }
 0x8f5   :  { %v1311_v42 = vpop.eup %1310 }
 0x8f6   :  { %v478_v43 = vadd.f32 1.0, %v1311_v42 }
 0x8f8   :  { %1312 = vrcp.f32 %v478_v43 }
 0x905   :  { %v1313_v44 = vpop.eup %1312 }
 0x906   :  { %v482_v47 = vmul.f32 %v1313_v44, %v375_v19 }
 0x966   :  { %v485_v45 = vpop.permute.xlu1 %484 }
 0x967   :  { %v487_v46 = vmul.f32 %v1313_v44, %v485_v45 }
 0x969   :  { %489 = vrot.lane.b32.xlu0 %v487_v46, %s1351_s20 }
 0x9db   :  { %v490_v48 = vpop.permute.xlu0 %489 }
 0x9dc   :  { %v492_v49 = vadd.f32 %v490_v48, %v482_v47 }
 0x9de   :  { %1314 = vtanh.f32 %v492_v49 }
 0x9eb   :  { %v1315_v50 = vpop.eup %1314 }
 0x9ec   :  { %495 = vrot.lane.b32.xlu1 %v1315_v50, %s1351_s20 }
 0xa5e   :  { %v496_v51 = vpop.permute.xlu1 %495 }
 0xa5f   :  { %v498_v52 = vmul.f32 %v1313_v44, %v496_v51 }
 0xa61   :  { %v499_v53 = vpack.c.bf16 %v498_v52, %v498_v52 }
 0xa63   :  { %501 = vrot.lane.b32.xlu0 %v499_v53, %s1352_s25 }
 0xad5   :  { %v502_v54 = vpop.permute.xlu0 %501 }
 0xad6   :  { %1205 = vmatmul.mubr.msk.bf16.vlgmr.msra.gmra.mxu1 %vm51_vm2, %v502_v54  ;;  %1213 = vmatmul.mubr.msk.bf16.vlgmr.msra.gmra.mxu0 %vm51_vm2, %v502_v54 }
 0xad7   :  { %1225 = vmatpush3.bf16.msra.mxu0 %v1385_v1  ;;  %1217 = vmatpush3.bf16.msra.mxu1 %v1420_v24 }
 0xad8   :  { %1226 = vmatprep.subr.bf16.mxu0 %v1348_v0  ;;  %1218 = vmatprep.subr.bf16.mxu1 %v1348_v0 }
 0xad9   :  { %1228 = vmatprep.mubr.msk.bf16.mxu0 %vm1349_vm1, %v1348_v0  ;;  %1220 = vmatprep.mubr.msk.bf16.mxu1 %vm1349_vm1, %v1348_v0 }
 0xadb   :  { %1227 = vmatpush3.bf16.msra.mxu0 %v1397_v3  ;;  %1219 = vmatpush3.bf16.msra.mxu1 %v1426_v25 }
 0xadc   :  { %1240 = vmatprep.subr.bf16.mxu0 %v1348_v0  ;;  %1232 = vmatprep.subr.bf16.mxu1 %v1348_v0 }
 0xb96   :  { %v540_v57 = vpop.f32.mrf.mxu1  ;;  %v585_v58 = vpop.f32.mrf.mxu0 }
 0xb97   :  { %v541_v59 = vadd.f32 %v1453_v33, %v540_v57  ;;  %v591_v60 = vadd.f32 %v585_v58, %v550_v56 }
 0xb98   :  { %v1206_v61 = vpop.f32.mrf.mxu1  ;;  %v1214_v62 = vpop.f32.mrf.mxu0 }
 0xb99   :  { %1075 = vst [vmem:[%s1617_s4 + $0x6] sm:$0x3] %v541_v59  ;;  %1316 = vtanh.f32 %v591_v60  ;;  %v1078_v7 = vmul.f32 -1.442695, %v591_v60 }
 0xb9a   :  { %v543_v63 = vpop.f32.mrf.mxu1  ;;  %v588_v2 = vpop.f32.mrf.mxu0 }
 0xb9b   :  { %1318 = vpow2.f32 %v1078_v7 }
 0xb9c   :  { %v1207_v4 = vpop.f32.mrf.mxu1  ;;  %v1215_v5 = vpop.f32.mrf.mxu0 }
 0xba6   :  { %v1317_v6 = vpop.eup %1316 }
 0xba7   :  { %601 = vrot.lane.b32.xlu1 %v1317_v6, %s1351_s20 }
 0xba8   :  { %v1319_v8 = vpop.eup %1318 }
 0xba9   :  { %v595_v9 = vadd.f32 1.0, %v1319_v8 }
 0xbab   :  { %1320 = vrcp.f32 %v595_v9 }
 0xbb8   :  { %v1321_v10 = vpop.eup %1320 }
 0xbb9   :  { %v599_v13 = vmul.f32 %v1321_v10, %v492_v49 }
 0xc19   :  { %v602_v11 = vpop.permute.xlu1 %601 }
 0xc1a   :  { %v604_v12 = vmul.f32 %v1321_v10, %v602_v11 }
 0xc1c   :  { %606 = vrot.lane.b32.xlu0 %v604_v12, %s1351_s20 }
 0xc8e   :  { %v607_v14 = vpop.permute.xlu0 %606 }
 0xc8f   :  { %v609_v15 = vadd.f32 %v607_v14, %v599_v13 }
 0xc91   :  { %1322 = vtanh.f32 %v609_v15 }
 0xc9e   :  { %v1323_v16 = vpop.eup %1322 }
 0xc9f   :  { %612 = vrot.lane.b32.xlu1 %v1323_v16, %s1351_s20 }
 0xd11   :  { %v613_v17 = vpop.permute.xlu1 %612 }
 0xd12   :  { %v615_v18 = vmul.f32 %v1321_v10, %v613_v17 }
 0xd14   :  { %v616_v19 = vpack.c.bf16 %v615_v18, %v615_v18 }
 0xd16   :  { %618 = vrot.lane.b32.xlu0 %v616_v19, %s1352_s25 }
 0xd88   :  { %v619_v20 = vpop.permute.xlu0 %618 }
 0xd89   :  { %1221 = vmatmul.mubr.msk.bf16.vlgmr.msra.gmra.mxu1 %vm51_vm2, %v619_v20  ;;  %1229 = vmatmul.mubr.msk.bf16.vlgmr.msra.gmra.mxu0 %vm51_vm2, %v619_v20 }
 0xd8a   :  { %1241 = vmatpush3.bf16.msra.mxu0 %v1385_v1  ;;  %1233 = vmatpush3.bf16.msra.mxu1 %v1420_v24 }
 0xd8b   :  { %1242 = vmatprep.subr.bf16.mxu0 %v1348_v0  ;;  %1234 = vmatprep.subr.bf16.mxu1 %v1348_v0 }
 0xd8c   :  { %1244 = vmatprep.mubr.msk.bf16.mxu0 %vm1349_vm1, %v1348_v0  ;;  %1236 = vmatprep.mubr.msk.bf16.mxu1 %vm1349_vm1, %v1348_v0 }
 0xd8e   :  { %1243 = vmatpush3.bf16.msra.mxu0 %v1397_v3  ;;  %1235 = vmatpush3.bf16.msra.mxu1 %v1426_v25 }
 0xd8f   :  { %1256 = vmatprep.subr.bf16.mxu0 %v1348_v0  ;;  %1248 = vmatprep.subr.bf16.mxu1 %v1348_v0 }
 0xe49   :  { %v657_v23 = vpop.f32.mrf.mxu1  ;;  %v702_v26 = vpop.f32.mrf.mxu0 }
 0xe4a   :  { %v658_v27 = vadd.f32 %v1453_v33, %v657_v23  ;;  %v708_v28 = vadd.f32 %v702_v26, %v667_v22 }
 0xe4b   :  { %v1222_v29 = vpop.f32.mrf.mxu1  ;;  %v1230_v30 = vpop.f32.mrf.mxu0 }
 0xe4c   :  { %1080 = vst [vmem:[%s1617_s4 + $0x8] sm:$0x3] %v658_v27  ;;  %1324 = vtanh.f32 %v708_v28  ;;  %v1083_v37 = vmul.f32 -1.442695, %v708_v28 }
 0xe4d   :  { %v660_v31 = vpop.f32.mrf.mxu1  ;;  %v705_v32 = vpop.f32.mrf.mxu0 }
 0xe4e   :  { %1326 = vpow2.f32 %v1083_v37 }
 0xe4f   :  { %v1223_v34 = vpop.f32.mrf.mxu1  ;;  %v1231_v35 = vpop.f32.mrf.mxu0 }
 0xe59   :  { %v1325_v36 = vpop.eup %1324 }
 0xe5a   :  { %718 = vrot.lane.b32.xlu1 %v1325_v36, %s1351_s20 }
 0xe5b   :  { %v1327_v38 = vpop.eup %1326 }
 0xe5c   :  { %v712_v39 = vadd.f32 1.0, %v1327_v38  ;;  %v1353_v38 = vmov 1966171168  }
 0xe5e   :  { %1328 = vrcp.f32 %v712_v39  ;;  %v1017_v39 = vunpack.c.l.s4 %v1353_v38 }
 0xe6b   :  { %v1329_v40 = vpop.eup %1328 }
 0xe6c   :  { %v716_v43 = vmul.f32 %v1329_v40, %v609_v15  ;;  %v1091_v15 = vld [vmem:[%s1614_s0 + $0x7] sm:$0x1] }
 0xe6d   :  { %v901_v16 = vunpack.c.l.bf16 %v1091_v15 }
 0xecc   :  { %v719_v41 = vpop.permute.xlu1 %718 }
 0xecd   :  { %v721_v42 = vmul.f32 %v1329_v40, %v719_v41  ;;  %v1354_v41 = vmov 1983009808  }
 0xecf   :  { %723 = vrot.lane.b32.xlu0 %v721_v42, %s1351_s20  ;;  %v1037_v42 = vunpack.c.l.s4 %v1354_v41 }
 0xf41   :  { %v724_v44 = vpop.permute.xlu0 %723 }
 0xf42   :  { %v726_v45 = vadd.f32 %v724_v44, %v716_v43  ;;  %v1018_v43 = vunpack.c.0.s8 %v1017_v39 }
 0xf44   :  { %1330 = vtanh.f32 %v726_v45 }
 0xf51   :  { %v1331_v46 = vpop.eup %1330 }
 0xf52   :  { %729 = vrot.lane.b32.xlu1 %v1331_v46, %s1351_s20 }
 0xfc4   :  { %v730_v47 = vpop.permute.xlu1 %729 }
 0xfc5   :  { %v732_v48 = vmul.f32 %v1329_v40, %v730_v47  ;;  %v1019_v40 = vlaneseq }
 0xfc7   :  { %v733_v49 = vpack.c.bf16 %v732_v48, %v732_v48  ;;  %v1020_v44 = vshrl.u32 %v1019_v40, 7 }
 0xfc9   :  { %735 = vrot.lane.b32.xlu0 %v733_v49, %s1352_s25  ;;  %v1021_v47 = vsub.s32 %v1018_v43, %v1020_v44 }
0x103b   :  { %v736_v50 = vpop.permute.xlu0 %735 }
0x103c   :  { %1237 = vmatmul.mubr.msk.bf16.vlgmr.msra.gmra.mxu1 %vm51_vm2, %v736_v50  ;;  %1245 = vmatmul.mubr.msk.bf16.vlgmr.msra.gmra.mxu0 %vm51_vm2, %v736_v50 }
0x103d   :  { %1257 = vmatpush3.bf16.msra.mxu0 %v1385_v1  ;;  %1249 = vmatpush3.bf16.msra.mxu1 %v1420_v24  ;;  %v1086_v1 = vld [vmem:[%s1614_s0 + $0x6] sm:$0x1]  ;;  %s1355_s0 = smov 96  }
0x103e   :  { %1258 = vmatprep.subr.bf16.mxu0 %v1348_v0  ;;  %1250 = vmatprep.subr.bf16.mxu1 %v1348_v0  ;;  %v784_v51 = vunpack.c.l.bf16 %v1086_v1 }
0x103f   :  { %1260 = vmatprep.mubr.msk.bf16.mxu0 %vm1349_vm1, %v1348_v0  ;;  %1252 = vmatprep.mubr.msk.bf16.mxu1 %vm1349_vm1, %v1348_v0 }
0x1041   :  { %1259 = vmatpush3.bf16.msra.mxu0 %v1397_v3  ;;  %1251 = vmatpush3.bf16.msra.mxu1 %v1426_v25 }
0x1042   :  { %1264 = vmatprep.subr.bf16.mxu1 %v1348_v0 }
0x10fc   :  { %v774_v52 = vpop.f32.mrf.mxu1  ;;  %v819_v53 = vpop.f32.mrf.mxu0 }
0x10fd   :  { %v775_v54 = vadd.f32 %v1453_v33, %v774_v52  ;;  %v825_v55 = vadd.f32 %v819_v53, %v784_v51 }
0x10fe   :  { %v1238_v56 = vpop.f32.mrf.mxu1  ;;  %v1246_v57 = vpop.f32.mrf.mxu0 }
0x10ff   :  { %1085 = vst [vmem:[%s1617_s4 + $0xa] sm:$0x3] %v775_v54  ;;  %1332 = vtanh.f32 %v825_v55  ;;  %v1088_v62 = vmul.f32 -1.442695, %v825_v55 }
0x1100   :  { %v777_v3 = vpop.f32.mrf.mxu1  ;;  %v822_v58 = vpop.f32.mrf.mxu0 }
0x1101   :  { %1334 = vpow2.f32 %v1088_v62 }
0x1102   :  { %v1239_v59 = vpop.f32.mrf.mxu1  ;;  %v1247_v60 = vpop.f32.mrf.mxu0 }
0x110c   :  { %v1333_v61 = vpop.eup %1332 }
0x110d   :  { %835 = vrot.lane.b32.xlu1 %v1333_v61, %s1351_s20 }
0x110e   :  { %v1335_v63 = vpop.eup %1334 }
0x110f   :  { %v829_v2 = vadd.f32 1.0, %v1335_v63 }
0x1111   :  { %1336 = vrcp.f32 %v829_v2 }
0x111e   :  { %v1337_v4 = vpop.eup %1336 }
0x111f   :  { %v833_v7 = vmul.f32 %v1337_v4, %v726_v45  ;;  %v1038_v45 = vunpack.c.0.s8 %v1037_v42 }
0x1121   :  { %v1041_v49 = vsub.s32 %v1038_v45, %v1020_v44 }
0x117f   :  { %v836_v5 = vpop.permute.xlu1 %835 }
0x1180   :  { %v838_v6 = vmul.f32 %v1337_v4, %v836_v5 }
0x1182   :  { %840 = vrot.lane.b32.xlu0 %v838_v6, %s1351_s20 }
0x11f4   :  { %v841_v8 = vpop.permute.xlu0 %840 }
0x11f5   :  { %v843_v9 = vadd.f32 %v841_v8, %v833_v7 }
0x11f7   :  { %1338 = vtanh.f32 %v843_v9 }
0x1204   :  { %v1339_v10 = vpop.eup %1338 }
0x1205   :  { %846 = vrot.lane.b32.xlu1 %v1339_v10, %s1351_s20 }
0x1277   :  { %v847_v11 = vpop.permute.xlu1 %846 }
0x1278   :  { %v849_v12 = vmul.f32 %v1337_v4, %v847_v11 }
0x127a   :  { %v850_v13 = vpack.c.bf16 %v849_v12, %v849_v12 }
0x127c   :  { %852 = vrot.lane.b32.xlu0 %v850_v13, %s1352_s25 }
0x12ee   :  { %v853_v14 = vpop.permute.xlu0 %852 }
0x12ef   :  { %1253 = vmatmul.mubr.msk.bf16.vlgmr.msra.gmra.mxu1 %vm51_vm2, %v853_v14  ;;  %1261 = vmatmul.mubr.msk.bf16.vlgmr.msra.gmra.mxu0 %vm51_vm2, %v853_v14 }
0x12f0   :  { %1265 = vmatpush3.bf16.msra.mxu1 %v1420_v24  ;;  %1268 = vmatprep.mubr.msk.bf16.mxu1 %vm1349_vm1, %v1348_v0 }
0x12f1   :  { %1266 = vmatprep.subr.bf16.mxu1 %v1348_v0 }
0x12f4   :  { %1267 = vmatpush3.bf16.msra.mxu1 %v1426_v25 }
0x13af   :  { %v891_v17 = vpop.f32.mrf.mxu1  ;;  %v936_v18 = vpop.f32.mrf.mxu0 }
0x13b0   :  { %v892_v19 = vadd.f32 %v1453_v33, %v891_v17  ;;  %v942_v20 = vadd.f32 %v936_v18, %v901_v16 }
0x13b1   :  { %v1254_v21 = vpop.f32.mrf.mxu1  ;;  %v1262_v22 = vpop.f32.mrf.mxu0 }
0x13b2   :  { %1090 = vst [vmem:[%s1617_s4 + $0xc] sm:$0x3] %v892_v19  ;;  %1340 = vtanh.f32 %v942_v20  ;;  %v1093_v27 = vmul.f32 -1.442695, %v942_v20 }
0x13b3   :  { %v894_v0 = vpop.f32.mrf.mxu1  ;;  %v939_v24 = vpop.f32.mrf.mxu0 }
0x13b4   :  { %1342 = vpow2.f32 %v1093_v27 }
0x13b5   :  { %v1255_v25 = vpop.f32.mrf.mxu1  ;;  %v1263_v23 = vpop.f32.mrf.mxu0 }
0x13bf   :  { %v1341_v26 = vpop.eup %1340 }
0x13c0   :  { %952 = vrot.lane.b32.xlu1 %v1341_v26, %s1351_s20 }
0x13c1   :  { %v1343_v28 = vpop.eup %1342 }
0x13c2   :  { %v946_v29 = vadd.f32 1.0, %v1343_v28 }
0x13c4   :  { %1344 = vrcp.f32 %v946_v29 }
0x13d1   :  { %v1345_v30 = vpop.eup %1344 }
0x13d2   :  { %v950_v34 = vmul.f32 %v1345_v30, %v843_v9 }
0x1432   :  { %v953_v31 = vpop.permute.xlu1 %952 }
0x1433   :  { %v955_v32 = vmul.f32 %v1345_v30, %v953_v31 }
0x1435   :  { %957 = vrot.lane.b32.xlu0 %v955_v32, %s1351_s20 }
0x14a7   :  { %v958_v35 = vpop.permute.xlu0 %957 }
0x14a8   :  { %v960_v36 = vadd.f32 %v958_v35, %v950_v34 }
0x14aa   :  { %1346 = vtanh.f32 %v960_v36  ;;  %v1042_v51 = vrot.slane %v960_v36, %v1041_v49 }
0x14b7   :  { %v1347_v37 = vpop.eup %1346 }
0x14b8   :  { %963 = vrot.lane.b32.xlu1 %v1347_v37, %s1351_s20 }
0x152a   :  { %v964_v46 = vpop.permute.xlu1 %963 }
0x152b   :  { %v966_v48 = vmul.f32 %v1345_v30, %v964_v46 }
0x152d   :  { %v967_v50 = vpack.c.bf16 %v966_v48, %v966_v48 }
0x152f   :  { %v1022_v1 = vrot.slane %v967_v50, %v1021_v47  ;;  %969 = vrot.lane.b32.xlu0 %v967_v50, %s1352_s25 }
0x1531   :  { %v1029_v52 = vrot.slane %v1022_v1, %v1021_v47 }
0x1533   :  { %1043 = vrot.lane.b32.xlu0 %v1042_v51, %s1355_s0  ;;  %1030 = vrot.lane.b32.xlu1 %v1029_v52, %s1352_s25 }
0x15a1   :  { %v970_v53 = vpop.permute.xlu0 %969 }
0x15a2   :  { %1269 = vmatmul.mubr.msk.bf16.vlgmr.msra.gmra.mxu1 %vm51_vm2, %v970_v53 }
0x15a5   :  { %v1044_v54 = vpop.permute.xlu0 %1043  ;;  %v1031_v55 = vpop.permute.xlu1 %1030 }
0x15a6   :  { %1047 = vst.msk [vmem:[#allocation3] sm:$0x3] %vm24_vm3, %v1044_v54 }
0x15a7   :  { %1034 = vst.msk [vmem:[#allocation2] sm:$0x1] %vm22_vm0, %v1031_v55 }
0x1662   :  { %v1008_v56 = vpop.f32.mrf.mxu1 }
0x1663   :  { %v1009_v57 = vadd.f32 %v1453_v33, %v1008_v56 }
0x1664   :  { %v1270_v3 = vpop.f32.mrf.mxu1 }
0x1665   :  { %1095 = vst [vmem:[%s1617_s4 + $0xe] sm:$0x3] %v1009_v57 }
0x1666   :  { %v1011_v58 = vpop.f32.mrf.mxu1 }
0x1668   :  { %v1271_v59 = vpop.f32.mrf.mxu1 }

</bundles_post_ra>
